<compile_context>
chip_gen: v7x
topology: tpu7x:2x2x1
jax: 0.10.0
libtpu: 0.0.40
codegen_flags: <defaults>
</compile_context>

<pallas_src>
import jax
import jax.numpy as jnp
import numpy as np
from jax.experimental import pallas as pl
from jax.experimental.pallas import tpu as pltpu

time_index = {'t_s': 0, 't_s_orig': 1, 't_e': 2, 't_e_orig': 3, 't_str': 4, 't_i': 5}

BS_TILE = 8                    # batch rows handled per grid step (sublane tile)
_STEP_COST_ENTITIES = 256      # ~0.35us/step expressed in "entity columns" of VALU work


def _round_up(x, m):
    return (x + m - 1) // m * m


def _device_kind():
    try:
        return jax.devices()[0].device_kind.lower()
    except Exception:
        return ""


def _table_dtype():
    """bf16 elementwise math only where the VPU supports it (v6e / v7x);
    v5e and older keep f32 end-to-end (no bf16 VALU there)."""
    kind = _device_kind()
    if ("v6" in kind) or ("v7" in kind) or ("7x" in kind):
        return jnp.bfloat16
    return jnp.float32


def _dim_semantics(num_entity_tiles):
    """Entity tiles are the big parallel axis.  On v7x request an explicit
    cross-TensorCore split (plain "parallel" does not change codegen)."""
    kind = _device_kind()
    if ("v7" in kind or "7x" in kind) and num_entity_tiles >= 2:
        return (pltpu.CORE_PARALLEL, pltpu.PARALLEL)
    return (pltpu.PARALLEL, pltpu.PARALLEL)


def _choose_entity_tiling(N):
    """Pick (tile_n, N_pad): lane-dense tiles with jointly bounded padding
    waste (padded columns are pure wasted VALU work in this compute-bound
    kernel) and per-grid-step pipeline overhead."""
    best = None
    for cand in (128, 256, 512, 1024, 2048):
        n_pad = _round_up(max(N, cand), cand)
        cost = (n_pad - N) + _STEP_COST_ENTITIES * (n_pad // cand)
        if best is None or cost < best[0]:
            best = (cost, cand, n_pad)
    return best[1], best[2]


# ----------------------------- score kernel --------------------------------
def score_kernel(q_t_ref, te_t_ref, te_ref, tab_ref, out_ref):
    # q_t_ref / te_t_ref : (1, D_pad, BS_TILE)  column layout (D on sublanes)
    # te_ref             : (1, BS_TILE, D_pad)  row layout for the MXU matmul
    # tab_ref            : (D_pad, tile_n)      entity-table block, entities on lanes
    # out_ref            : (BS_TILE, tile_n)    lane-dense score block
    cdt = tab_ref.dtype                          # f32 (v5e) or bf16 (v6e/v7x)
    tab = tab_ref[...]                           # (D_pad, tile_n)
    te = te_ref[0].astype(cdt)                   # (BS_TILE, D_pad)

    # dots[b, n] = <E[n], t_e[b]> -- one MXU matmul per (entity, batch) tile
    dots = jnp.dot(te, tab, preferred_element_type=jnp.float32)  # (BS_TILE, tile_n)
    dots_c = dots.astype(cdt)

    q_t = q_t_ref[0].astype(cdt)                 # (D_pad, BS_TILE)
    te_t = te_t_ref[0].astype(cdt)

    # Short unrolled batch loop (always BS_TILE == 8): each iteration is one
    # (D_pad, tile_n) VPU slab (sub + mul + add + abs in the compute dtype)
    # plus a sublane reduce accumulated in f32.  All reduced rows are collected
    # and written with ONE unmasked full-block store (no per-row vst.msk).
    rows = []
    for b in range(BS_TILE):
        q_col = q_t[:, b:b + 1]                  # (D_pad, 1)
        t_col = te_t[:, b:b + 1]                 # (D_pad, 1)
        d_row = dots_c[b:b + 1, :]               # (1, tile_n)
        diff = q_col - tab + t_col * d_row       # (D_pad, tile_n)
        rows.append(jnp.sum(jnp.abs(diff).astype(jnp.float32),
                            axis=0, keepdims=True))
    out_ref[...] = jnp.concatenate(rows, axis=0)  # single (BS_TILE, tile_n) store


def prepare_entity_table(E):
    """Pad + transpose + (on v6e/v7x) down-cast the entity table ONCE,
    outside the forward pass."""
    N, D = E.shape
    dtype = _table_dtype()
    D_pad = _round_up(D, 16)                     # sublane packing (16 covers bf16)
    tile_n, N_pad = _choose_entity_tiling(N)
    E_pad = jnp.zeros((N_pad, D_pad), dtype).at[:N, :D].set(E.astype(dtype))
    return jnp.transpose(E_pad), tile_n          # (D_pad, N_pad)


def score_all_entities(q, t_e, E_t_pad, tile_n, num_entities):
    """q, t_e: (bs, D) f32.  E_t_pad: (D_pad, N_pad) pre-transposed table."""
    bs, D = q.shape
    D_pad, N_pad = E_t_pad.shape
    bs_pad = _round_up(bs, BS_TILE)
    nb = bs_pad // BS_TILE
    nn = N_pad // tile_n

    # tiny per-call padding / layout plumbing (bs x D only)
    qp = jnp.zeros((bs_pad, D_pad), jnp.float32).at[:bs, :D].set(q)
    tp = jnp.zeros((bs_pad, D_pad), jnp.float32).at[:bs, :D].set(t_e)
    q_t = jnp.transpose(qp).reshape(D_pad, nb, BS_TILE).transpose(1, 0, 2)
    te_t = jnp.transpose(tp).reshape(D_pad, nb, BS_TILE).transpose(1, 0, 2)
    te_r = tp.reshape(nb, BS_TILE, D_pad)

    out = pl.pallas_call(
        score_kernel,
        out_shape=jax.ShapeDtypeStruct((bs_pad, N_pad), jnp.float32),
        grid=(nn, nb),        # entity tiles outer: the big table block is only
                              # DMA'd when the entity index changes.
        in_specs=[
            pl.BlockSpec((1, D_pad, BS_TILE), lambda j, i: (i, 0, 0)),  # q_t cols
            pl.BlockSpec((1, D_pad, BS_TILE), lambda j, i: (i, 0, 0)),  # t_e cols
            pl.BlockSpec((1, BS_TILE, D_pad), lambda j, i: (i, 0, 0)),  # t_e rows
            pl.BlockSpec((D_pad, tile_n), lambda j, i: (0, j)),         # table
        ],
        out_specs=pl.BlockSpec((BS_TILE, tile_n), lambda j, i: (i, j)),
        compiler_params=pltpu.CompilerParams(
            dimension_semantics=_dim_semantics(nn)),
    )(q_t, te_t, te_r, E_t_pad)
    return out[:bs, :num_entities]


# ----------------------------- forward (o = None branch) --------------------
def time_transe_forward(params, s, r, o, t):
    if o is not None:
        # TODO(synk): pointwise (o given) branch not kernelized here.
        raise NotImplementedError("only the o=None all-entity scoring branch")
    if t is None:
        # TODO(synk): t=None branch (score against all time intervals).
        raise NotImplementedError("t=None branch not implemented")

    E, R, T = params["E"], params["R"], params["T"]
    if t.shape[-1] == len(time_index):
        t_sel = t[:, :, 0]                                   # (bs, 1)
    else:
        t_sel = t[:, 0, :]

    s_e = jnp.take(E, s[:, 0], axis=0)                       # (bs, D)
    r_e = jnp.take(R, r[:, 0], axis=0)
    t_e = jnp.take(T, t_sel[:, 0], axis=0)

    def proj(x, tt):                                         # HyTE time projection
        return x - tt * jnp.sum(x * tt, axis=-1, keepdims=True)

    q = proj(s_e, t_e) + proj(r_e, t_e)                      # s_t + r_t, (bs, D)
    return score_all_entities(q, t_e, params["E_t_pad"], params["tile_n"],
                              E.shape[0])


# ----------------------------- reference (plain JAX) ------------------------
def time_transe_ref(params, s, r, o, t):
    E, R, T = params["E"], params["R"], params["T"]
    if t.shape[-1] == len(time_index):
        t_sel = t[:, :, 0]
    else:
        t_sel = t[:, 0, :]
    s_e = E[s]                                               # (bs, 1, D)
    r_e = R[r]
    o_e = E[None, :, :] if o is None else E[o]
    t_e = T[t_sel]                                           # (bs, 1, D)

    def proj(x, tt):
        return x - tt * jnp.sum(x * tt, axis=-1, keepdims=True)

    s_t = proj(s_e, t_e)
    r_t = proj(r_e, t_e)
    o_t = proj(o_e, t_e)
    return jnp.sum(jnp.abs(s_t + r_t - o_t), axis=-1)        # (bs, N)


# ----------------------------- deterministic params -------------------------
def make_params(key, entity_count, relation_count, time_count, D):
    k1, k2, k3 = jax.random.split(key, 3)
    E = 0.05 * jax.random.normal(k1, (entity_count, D), jnp.float32)
    R = 0.05 * jax.random.normal(k2, (relation_count, D), jnp.float32)
    T = jax.random.uniform(k3, (time_count, D), jnp.float32, -0.1, 0.1)
    E_t_pad, tile_n = prepare_entity_table(E)
    return {"E": E, "R": R, "T": T, "E_t_pad": E_t_pad, "tile_n": tile_n}


if __name__ == "__main__":
    # small but non-trivial shapes: entity count deliberately NOT a multiple
    # of 128, D < 128, bs < 8 -> exercises all padding paths.
    entity_count, relation_count, time_count, D = 300, 12, 40, 32
    bs = 4

    key = jax.random.PRNGKey(0)
    kp, ks, kr, kt = jax.random.split(key, 4)
    params = make_params(kp, entity_count, relation_count, time_count, D)

    s = jax.random.randint(ks, (bs, 1), 0, entity_count, jnp.int32)
    r = jax.random.randint(kr, (bs, 1), 0, relation_count, jnp.int32)
    t = jax.random.randint(kt, (bs, 1, len(time_index)), 0, time_count, jnp.int32)

    fwd = jax.jit(lambda s_, r_, t_: time_transe_forward(params, s_, r_, None, t_))
    out = jax.block_until_ready(fwd(s, r, t))

    ref = np.asarray(time_transe_ref(params, s, r, None, t))
    out_np = np.asarray(out)
    assert out_np.shape == (bs, entity_count)
    assert np.all(np.isfinite(out_np))
    # loose tolerance: table may be stored/computed in bf16 on v6e/v7x
    assert np.allclose(out_np, ref, rtol=2e-2, atol=2e-3), \
        "Pallas result does not match reference"

    print("KERNEL_OK")
</pallas_src>

<mosaic_0001>
module attributes {stable_mosaic.version = 11 : i64} {
  func.func @score_kernel(%arg0: i32, %arg1: i32, %arg2: memref<1x32x8xf32, #tpu.memory_space<vmem>>, %arg3: memref<1x32x8xf32, #tpu.memory_space<vmem>>, %arg4: memref<1x8x32xf32, #tpu.memory_space<vmem>>, %arg5: memref<32x512xf32, #tpu.memory_space<vmem>>, %arg6: memref<8x512xf32, #tpu.memory_space<vmem>>) attributes {dimension_semantics = [#tpu.dimension_semantics<parallel>, #tpu.dimension_semantics<parallel>], iteration_bounds = array<i64: 1, 1>, scalar_prefetch = 0 : i64, scratch_operands = 0 : i64, tpu.core_type = #tpu.core_type<tc>, window_params = [{transform_indices = @transform_0, window_bounds = array<i64: 1, 32, 8>}, {transform_indices = @transform_1, window_bounds = array<i64: 1, 32, 8>}, {transform_indices = @transform_2, window_bounds = array<i64: 1, 8, 32>}, {transform_indices = @transform_3, window_bounds = array<i64: 32, 512>}, {transform_indices = @transform_4, window_bounds = array<i64: 8, 512>}]} {
    %c0 = arith.constant 0 : index
    %c0_0 = arith.constant 0 : index
    %0 = vector.load %arg5[%c0, %c0_0] : memref<32x512xf32, #tpu.memory_space<vmem>>, vector<32x512xf32>
    %c0_1 = arith.constant 0 : index
    %c0_2 = arith.constant 0 : index
    %c0_3 = arith.constant 0 : index
    %1 = vector.load %arg4[%c0_1, %c0_2, %c0_3] : memref<1x8x32xf32, #tpu.memory_space<vmem>>, vector<1x8x32xf32>
    %2 = vector.shape_cast %1 : vector<1x8x32xf32> to vector<8x32xf32>
    %cst = arith.constant dense<0.000000e+00> : vector<8x512xf32>
    %3 = tpu.matmul %2, %0, %cst {dimension_numbers = #tpu.dot_dimension_numbers<[1], [0], [0], [1], [0, 0, 1, 1], [], []>} : vector<8x32xf32>, vector<32x512xf32>, vector<8x512xf32> -> vector<8x512xf32>
    %c0_4 = arith.constant 0 : index
    %c0_5 = arith.constant 0 : index
    %c0_6 = arith.constant 0 : index
    %4 = vector.load %arg2[%c0_4, %c0_5, %c0_6] : memref<1x32x8xf32, #tpu.memory_space<vmem>>, vector<1x32x8xf32>
    %5 = vector.shape_cast %4 : vector<1x32x8xf32> to vector<32x8xf32>
    %c0_7 = arith.constant 0 : index
    %c0_8 = arith.constant 0 : index
    %c0_9 = arith.constant 0 : index
    %6 = vector.load %arg3[%c0_7, %c0_8, %c0_9] : memref<1x32x8xf32, #tpu.memory_space<vmem>>, vector<1x32x8xf32>
    %7 = vector.shape_cast %6 : vector<1x32x8xf32> to vector<32x8xf32>
    %8 = vector.extract_strided_slice %5 {offsets = [0, 0], sizes = [32, 1], strides = [1, 1]} : vector<32x8xf32> to vector<32x1xf32>
    %9 = vector.extract_strided_slice %7 {offsets = [0, 0], sizes = [32, 1], strides = [1, 1]} : vector<32x8xf32> to vector<32x1xf32>
    %10 = vector.extract_strided_slice %3 {offsets = [0, 0], sizes = [1, 512], strides = [1, 1]} : vector<8x512xf32> to vector<1x512xf32>
    %11 = vector.broadcast %8 : vector<32x1xf32> to vector<32x512xf32>
    %12 = arith.subf %11, %0 : vector<32x512xf32>
    %13 = vector.broadcast %9 : vector<32x1xf32> to vector<32x512xf32>
    %14 = vector.broadcast %10 : vector<1x512xf32> to vector<32x512xf32>
    %15 = arith.mulf %13, %14 : vector<32x512xf32>
    %16 = arith.addf %12, %15 : vector<32x512xf32>
    %17 = math.absf %16 : vector<32x512xf32>
    %cst_10 = arith.constant dense<0.000000e+00> : vector<512xf32>
    %18 = vector.multi_reduction <add>, %17, %cst_10 [0] : vector<32x512xf32> to vector<512xf32>
    %19 = vector.shape_cast %18 : vector<512xf32> to vector<1x512xf32>
    %20 = vector.extract_strided_slice %5 {offsets = [0, 1], sizes = [32, 1], strides = [1, 1]} : vector<32x8xf32> to vector<32x1xf32>
    %21 = vector.extract_strided_slice %7 {offsets = [0, 1], sizes = [32, 1], strides = [1, 1]} : vector<32x8xf32> to vector<32x1xf32>
    %22 = vector.extract_strided_slice %3 {offsets = [1, 0], sizes = [1, 512], strides = [1, 1]} : vector<8x512xf32> to vector<1x512xf32>
    %23 = vector.broadcast %20 : vector<32x1xf32> to vector<32x512xf32>
    %24 = arith.subf %23, %0 : vector<32x512xf32>
    %25 = vector.broadcast %21 : vector<32x1xf32> to vector<32x512xf32>
    %26 = vector.broadcast %22 : vector<1x512xf32> to vector<32x512xf32>
    %27 = arith.mulf %25, %26 : vector<32x512xf32>
    %28 = arith.addf %24, %27 : vector<32x512xf32>
    %29 = math.absf %28 : vector<32x512xf32>
    %cst_11 = arith.constant dense<0.000000e+00> : vector<512xf32>
    %30 = vector.multi_reduction <add>, %29, %cst_11 [0] : vector<32x512xf32> to vector<512xf32>
    %31 = vector.shape_cast %30 : vector<512xf32> to vector<1x512xf32>
    %32 = vector.extract_strided_slice %5 {offsets = [0, 2], sizes = [32, 1], strides = [1, 1]} : vector<32x8xf32> to vector<32x1xf32>
    %33 = vector.extract_strided_slice %7 {offsets = [0, 2], sizes = [32, 1], strides = [1, 1]} : vector<32x8xf32> to vector<32x1xf32>
    %34 = vector.extract_strided_slice %3 {offsets = [2, 0], sizes = [1, 512], strides = [1, 1]} : vector<8x512xf32> to vector<1x512xf32>
    %35 = vector.broadcast %32 : vector<32x1xf32> to vector<32x512xf32>
    %36 = arith.subf %35, %0 : vector<32x512xf32>
    %37 = vector.broadcast %33 : vector<32x1xf32> to vector<32x512xf32>
    %38 = vector.broadcast %34 : vector<1x512xf32> to vector<32x512xf32>
    %39 = arith.mulf %37, %38 : vector<32x512xf32>
    %40 = arith.addf %36, %39 : vector<32x512xf32>
    %41 = math.absf %40 : vector<32x512xf32>
    %cst_12 = arith.constant dense<0.000000e+00> : vector<512xf32>
    %42 = vector.multi_reduction <add>, %41, %cst_12 [0] : vector<32x512xf32> to vector<512xf32>
    %43 = vector.shape_cast %42 : vector<512xf32> to vector<1x512xf32>
    %44 = vector.extract_strided_slice %5 {offsets = [0, 3], sizes = [32, 1], strides = [1, 1]} : vector<32x8xf32> to vector<32x1xf32>
    %45 = vector.extract_strided_slice %7 {offsets = [0, 3], sizes = [32, 1], strides = [1, 1]} : vector<32x8xf32> to vector<32x1xf32>
    %46 = vector.extract_strided_slice %3 {offsets = [3, 0], sizes = [1, 512], strides = [1, 1]} : vector<8x512xf32> to vector<1x512xf32>
    %47 = vector.broadcast %44 : vector<32x1xf32> to vector<32x512xf32>
    %48 = arith.subf %47, %0 : vector<32x512xf32>
    %49 = vector.broadcast %45 : vector<32x1xf32> to vector<32x512xf32>
    %50 = vector.broadcast %46 : vector<1x512xf32> to vector<32x512xf32>
    %51 = arith.mulf %49, %50 : vector<32x512xf32>
    %52 = arith.addf %48, %51 : vector<32x512xf32>
    %53 = math.absf %52 : vector<32x512xf32>
    %cst_13 = arith.constant dense<0.000000e+00> : vector<512xf32>
    %54 = vector.multi_reduction <add>, %53, %cst_13 [0] : vector<32x512xf32> to vector<512xf32>
    %55 = vector.shape_cast %54 : vector<512xf32> to vector<1x512xf32>
    %56 = vector.extract_strided_slice %5 {offsets = [0, 4], sizes = [32, 1], strides = [1, 1]} : vector<32x8xf32> to vector<32x1xf32>
    %57 = vector.extract_strided_slice %7 {offsets = [0, 4], sizes = [32, 1], strides = [1, 1]} : vector<32x8xf32> to vector<32x1xf32>
    %58 = vector.extract_strided_slice %3 {offsets = [4, 0], sizes = [1, 512], strides = [1, 1]} : vector<8x512xf32> to vector<1x512xf32>
    %59 = vector.broadcast %56 : vector<32x1xf32> to vector<32x512xf32>
    %60 = arith.subf %59, %0 : vector<32x512xf32>
    %61 = vector.broadcast %57 : vector<32x1xf32> to vector<32x512xf32>
    %62 = vector.broadcast %58 : vector<1x512xf32> to vector<32x512xf32>
    %63 = arith.mulf %61, %62 : vector<32x512xf32>
    %64 = arith.addf %60, %63 : vector<32x512xf32>
    %65 = math.absf %64 : vector<32x512xf32>
    %cst_14 = arith.constant dense<0.000000e+00> : vector<512xf32>
    %66 = vector.multi_reduction <add>, %65, %cst_14 [0] : vector<32x512xf32> to vector<512xf32>
    %67 = vector.shape_cast %66 : vector<512xf32> to vector<1x512xf32>
    %68 = vector.extract_strided_slice %5 {offsets = [0, 5], sizes = [32, 1], strides = [1, 1]} : vector<32x8xf32> to vector<32x1xf32>
    %69 = vector.extract_strided_slice %7 {offsets = [0, 5], sizes = [32, 1], strides = [1, 1]} : vector<32x8xf32> to vector<32x1xf32>
    %70 = vector.extract_strided_slice %3 {offsets = [5, 0], sizes = [1, 512], strides = [1, 1]} : vector<8x512xf32> to vector<1x512xf32>
    %71 = vector.broadcast %68 : vector<32x1xf32> to vector<32x512xf32>
    %72 = arith.subf %71, %0 : vector<32x512xf32>
    %73 = vector.broadcast %69 : vector<32x1xf32> to vector<32x512xf32>
    %74 = vector.broadcast %70 : vector<1x512xf32> to vector<32x512xf32>
    %75 = arith.mulf %73, %74 : vector<32x512xf32>
    %76 = arith.addf %72, %75 : vector<32x512xf32>
    %77 = math.absf %76 : vector<32x512xf32>
    %cst_15 = arith.constant dense<0.000000e+00> : vector<512xf32>
    %78 = vector.multi_reduction <add>, %77, %cst_15 [0] : vector<32x512xf32> to vector<512xf32>
    %79 = vector.shape_cast %78 : vector<512xf32> to vector<1x512xf32>
    %80 = vector.extract_strided_slice %5 {offsets = [0, 6], sizes = [32, 1], strides = [1, 1]} : vector<32x8xf32> to vector<32x1xf32>
    %81 = vector.extract_strided_slice %7 {offsets = [0, 6], sizes = [32, 1], strides = [1, 1]} : vector<32x8xf32> to vector<32x1xf32>
    %82 = vector.extract_strided_slice %3 {offsets = [6, 0], sizes = [1, 512], strides = [1, 1]} : vector<8x512xf32> to vector<1x512xf32>
    %83 = vector.broadcast %80 : vector<32x1xf32> to vector<32x512xf32>
    %84 = arith.subf %83, %0 : vector<32x512xf32>
    %85 = vector.broadcast %81 : vector<32x1xf32> to vector<32x512xf32>
    %86 = vector.broadcast %82 : vector<1x512xf32> to vector<32x512xf32>
    %87 = arith.mulf %85, %86 : vector<32x512xf32>
    %88 = arith.addf %84, %87 : vector<32x512xf32>
    %89 = math.absf %88 : vector<32x512xf32>
    %cst_16 = arith.constant dense<0.000000e+00> : vector<512xf32>
    %90 = vector.multi_reduction <add>, %89, %cst_16 [0] : vector<32x512xf32> to vector<512xf32>
    %91 = vector.shape_cast %90 : vector<512xf32> to vector<1x512xf32>
    %92 = vector.extract_strided_slice %5 {offsets = [0, 7], sizes = [32, 1], strides = [1, 1]} : vector<32x8xf32> to vector<32x1xf32>
    %93 = vector.extract_strided_slice %7 {offsets = [0, 7], sizes = [32, 1], strides = [1, 1]} : vector<32x8xf32> to vector<32x1xf32>
    %94 = vector.extract_strided_slice %3 {offsets = [7, 0], sizes = [1, 512], strides = [1, 1]} : vector<8x512xf32> to vector<1x512xf32>
    %95 = vector.broadcast %92 : vector<32x1xf32> to vector<32x512xf32>
    %96 = arith.subf %95, %0 : vector<32x512xf32>
    %97 = vector.broadcast %93 : vector<32x1xf32> to vector<32x512xf32>
    %98 = vector.broadcast %94 : vector<1x512xf32> to vector<32x512xf32>
    %99 = arith.mulf %97, %98 : vector<32x512xf32>
    %100 = arith.addf %96, %99 : vector<32x512xf32>
    %101 = math.absf %100 : vector<32x512xf32>
    %cst_17 = arith.constant dense<0.000000e+00> : vector<512xf32>
    %102 = vector.multi_reduction <add>, %101, %cst_17 [0] : vector<32x512xf32> to vector<512xf32>
    %103 = vector.shape_cast %102 : vector<512xf32> to vector<1x512xf32>
    %104 = tpu.concatenate %19, %31, %43, %55, %67, %79, %91, %103 in 0 : vector<1x512xf32>, vector<1x512xf32>, vector<1x512xf32>, vector<1x512xf32>, vector<1x512xf32>, vector<1x512xf32>, vector<1x512xf32>, vector<1x512xf32> -> vector<8x512xf32>
    %c0_18 = arith.constant 0 : index
    %c0_19 = arith.constant 0 : index
    %105 = vector.load %arg6[%c0_18, %c0_19] : memref<8x512xf32, #tpu.memory_space<vmem>>, vector<8x512xf32>
    tpu.vector_store %arg6[%c0_18, %c0_19], %104 {strides = array<i32>} : memref<8x512xf32, #tpu.memory_space<vmem>>, vector<8x512xf32>,
    return
  }
  func.func @transform_0(%arg0: i32, %arg1: i32) -> (i32, i32, i32) {
    %c0_i32 = arith.constant 0 : i32
    %c0_i32_0 = arith.constant 0 : i32
    %c0_i32_1 = arith.constant 0 : i32
    return %arg1, %c0_i32, %c0_i32_0 : i32, i32, i32
  }
  func.func @transform_1(%arg0: i32, %arg1: i32) -> (i32, i32, i32) {
    %c0_i32 = arith.constant 0 : i32
    %c0_i32_0 = arith.constant 0 : i32
    %c0_i32_1 = arith.constant 0 : i32
    return %arg1, %c0_i32, %c0_i32_0 : i32, i32, i32
  }
  func.func @transform_2(%arg0: i32, %arg1: i32) -> (i32, i32, i32) {
    %c0_i32 = arith.constant 0 : i32
    %c0_i32_0 = arith.constant 0 : i32
    %c0_i32_1 = arith.constant 0 : i32
    return %arg1, %c0_i32, %c0_i32_0 : i32, i32, i32
  }
  func.func @transform_3(%arg0: i32, %arg1: i32) -> (i32, i32) {
    %c0_i32 = arith.constant 0 : i32
    %c0_i32_0 = arith.constant 0 : i32
    return %c0_i32, %arg0 : i32, i32
  }
  func.func @transform_4(%arg0: i32, %arg1: i32) -> (i32, i32) {
    %c0_i32 = arith.constant 0 : i32
    return %arg1, %arg0 : i32, i32
  }
}

</mosaic_0001>

<bundles_post_ra>
// kernel: _lambda_.1
= control target key start
LH: loop header
LB: loop body
LE: loop exit
PB: predicated region body
PF: predicated region fallthrough
CT: control target
= control target key end

     0   :  { %v1488_v0 = vmov 0   ;;  %v1489_v4 = vmov 0.0   ;;  %vm34_vm0 = vcmask 261120   ;;  %v1490_v34 = vmov 1   ;;  %s2963_s0 = inlined_call_operand.vmem [shape: f32[1,32,8], index: 0, kind: input, shape index: {}]   ;;  %s2964_s3 = inlined_call_operand.vmem [shape: f32[32,512], index: 3, kind: input, shape index: {}]   ;;  %s2965_s1 = inlined_call_operand.vmem [shape: f32[1,32,8], index: 1, kind: input, shape index: {}]   ;;  %s2966_s2 = inlined_call_operand.vmem [shape: f32[1,8,32], index: 2, kind: input, shape index: {}]   ;;  %s2967_s4 = inlined_call_operand.vmem [shape: f32[8,512], index: 4, kind: output, shape index: {}]  }
   0x1   :  { %1451 = vset.pattern.permute.xlu1 %v1488_v0  ;;  %v1525_v1 = vld [vmem:[%s2963_s0 + $0x10] sm:$0xff]  ;;  %v1530_v2 = vld [vmem:[%s2964_s3 + $0x8] sm:$0xff]  ;;  %102 = vmatprep.mubr.f32.mxu0 %v1489_v4  ;;  %v1543_v6 = vld [vmem:[%s2964_s3 + $0x18] sm:$0xff]  ;;  %v1491_v36 = vmov 2   ;;  %v1492_v37 = vmov 3   ;;  %v1493_v38 = vmov 4  }
   0x2   :  { %3095 = vst [vmem:[#allocation2_spill] sm:$0xff] %v1530_v2  ;;  %v1535_v3 = vld [vmem:[%s2964_s3 + $0x28] sm:$0xff]  ;;  %200 = vperm.xlu1 %1451, %v1525_v1   ;;  %3097 = vst [vmem:[#allocation4_spill] sm:$0xff] %v1543_v6  ;;  %v1548_v7 = vld [vmem:[%s2964_s3 + $0x38] sm:$0xff]  ;;  %173 = vmatprep.mubr.f32.mxu1 %v1489_v4  ;;  %v1494_v39 = vmov 5   ;;  %v1495_v40 = vmov 6  }
   0x3   :  { %3096 = vst [vmem:[#allocation3_spill] sm:$0xff] %v1535_v3  ;;  %v1425_v5 = vpack.c.bf16 %v1535_v3, %v1530_v2  ;;  %3098 = vst [vmem:[#allocation5_spill] sm:$0xff] %v1548_v7  ;;  %v1553_v8 = vld [vmem:[%s2964_s3] sm:$0xff]  ;;  %v1433_v9 = vpack.c.bf16 %v1548_v7, %v1543_v6  ;;  %v1565_v11 = vld [vmem:[%s2964_s3 + $0x10] sm:$0xff]  ;;  %1450 = vset.pattern.permute.xlu0 %v1488_v0  ;;  %v1496_v41 = vmov 7   ;;  %vm1380_vm1 = vcmask 1040384  }
   0x4   :  { %3099 = vst [vmem:[#allocation6_spill] sm:$0xff] %v1553_v8  ;;  %v1560_v10 = vld [vmem:[%s2964_s3 + $0x20] sm:$0xff]  ;;  %3101 = vst [vmem:[#allocation8_spill] sm:$0xff] %v1565_v11  ;;  %v1570_v12 = vld [vmem:[%s2964_s3 + $0x30] sm:$0xff]  ;;  %vm1385_vm2 = vcmask 1041408   ;;  %vm1390_vm3 = vcmask 1042432  }
   0x5   :  { %3100 = vst [vmem:[#allocation7_spill] sm:$0xff] %v1560_v10  ;;  %3102 = vst [vmem:[#allocation9_spill] sm:$0xff] %v1570_v12  ;;  %1426 = vmatprep.subr.bf16.mxu0 %v1425_v5  ;;  %v1427_v13 = vpack.c.bf16 %v1560_v10, %v1553_v8  ;;  %v1435_v14 = vpack.c.bf16 %v1570_v12, %v1565_v11  ;;  %v1579_v15 = vld [vmem:[%s2963_s0 + $0x18] sm:$0xff]  ;;  %v1584_v16 = vld [vmem:[%s2964_s3 + $0x48] sm:$0xff]  ;;  %1434 = vmatprep.subr.bf16.mxu1 %v1433_v9  ;;  %vm1395_vm4 = vcmask 1043456   ;;  %vm1400_vm5 = vcmask 1044480  }
   0x6   :  { %3103 = vst [vmem:[#allocation10_spill] sm:$0xff] %v1584_v16  ;;  %v1589_v17 = vld [vmem:[%s2964_s3 + $0x68] sm:$0xff]  ;;  %v1596_v19 = vld [vmem:[%s2964_s3 + $0x58] sm:$0xff]  ;;  %v1606_v21 = vld [vmem:[%s2964_s3 + $0x40] sm:$0xff]  ;;  %205 = vperm.xlu1 %1451, %v1579_v15   ;;  %vm1405_vm6 = vcmask 1045504   ;;  %vm1410_vm7 = vcmask 1046528  }
   0x7   :  { %3104 = vst [vmem:[#allocation11_spill] sm:$0xff] %v1589_v17  ;;  %v1429_v18 = vpack.c.bf16 %v1589_v17, %v1584_v16  ;;  %3105 = vst [vmem:[#allocation12_spill] sm:$0xff] %v1596_v19  ;;  %v1601_v20 = vld [vmem:[%s2964_s3 + $0x78] sm:$0xff]  ;;  %1428 = vmatpush1.bf16.msra.mxu0 %v1427_v13  ;;  %1436 = vmatpush1.bf16.msra.mxu1 %v1435_v14  ;;  %v1613_v23 = vld [vmem:[%s2964_s3 + $0x60] sm:$0xff] }
   0x8   :  { %3106 = vst [vmem:[#allocation13_spill] sm:$0xff] %v1601_v20  ;;  %3107 = vst [vmem:[#allocation14_spill] sm:$0xff] %v1606_v21  ;;  %v1437_v22 = vpack.c.bf16 %v1601_v20, %v1596_v19  ;;  %v1618_v24 = vld [vmem:[%s2964_s3 + $0x50] sm:$0xff]  ;;  %v1431_v26 = vpack.c.bf16 %v1613_v23, %v1606_v21  ;;  %v1633_v28 = vld [vmem:[%s2965_s1 + $0x8] sm:$0xff] }
   0x9   :  { %3108 = vst [vmem:[#allocation15_spill] sm:$0xff] %v1618_v24  ;;  %v1623_v25 = vld [vmem:[%s2964_s3 + $0x70] sm:$0xff]  ;;  %1430 = vmatprep.subr.bf16.mxu0 %v1429_v18  ;;  %v1638_v29 = vld [vmem:[%s2963_s0] sm:$0xff]  ;;  %v1648_v31 = vld [vmem:[%s2965_s1 + $0x18] sm:$0xff] }
   0xa   :  { %3109 = vst [vmem:[#allocation16_spill] sm:$0xff] %v1623_v25  ;;  %v1439_v27 = vpack.c.bf16 %v1623_v25, %v1618_v24  ;;  %1438 = vmatprep.subr.bf16.mxu1 %v1437_v22  ;;  %190 = vperm.xlu0 %1450, %v1638_v29   ;;  %v33_v30 = vld [vmem:[%s2966_s2] sm:$0xff]  ;;  %v1653_v32 = vld [vmem:[%s2963_s0 + $0x8] sm:$0xff]  ;;  %v1666_v35 = vld [vmem:[%s2965_s1 + $0x10] sm:$0xff] }
   0xb   :  { %1432 = vmatpush1.bf16.msra.mxu0 %v1431_v26  ;;  %231 = vperm.xlu1 %1451, %v1633_v28   ;;  %v1660_v33 = vld [vmem:[%s2965_s1] sm:$0xff] }
   0xc   :  { %1440 = vmatpush1.bf16.msra.mxu1 %v1439_v27 }
   0xe   :  { %1423 = vmatmul.mubr.msk.f32.vlgmr.msra.gmra.mrb[0].mxu0 %vm34_vm0, %v33_v30  ;;  %195 = vperm.xlu0 %1450, %v1653_v32  }
   0xf   :  { %1424 = vmatmul.mubr.msk.f32.vlgmr.msra.gmra.mrb[0].mxu1 %vm34_vm0, %v33_v30  ;;  %241 = vperm.xlu1 %1451, %v1648_v31  }
  0x12   :  { %226 = vperm.xlu0 %1450, %v1660_v33  }
  0x13   :  { %1453 = vset.pattern.permute.xlu1 %v1490_v34 }
  0x14   :  { %349 = vperm.xlu1 %1453, %v1653_v32  }
  0x16   :  { %236 = vperm.xlu0 %1450, %v1666_v35  }
  0x18   :  { %353 = vperm.xlu1 %1453, %v1525_v1  }
  0x1a   :  { %1452 = vset.pattern.permute.xlu0 %v1490_v34 }
  0x1b   :  { %345 = vperm.xlu0 %1452, %v1638_v29  }
  0x1c   :  { %377 = vperm.xlu1 %1453, %v1660_v33  }
  0x1f   :  { %357 = vperm.xlu0 %1452, %v1579_v15  }
  0x20   :  { %385 = vperm.xlu1 %1453, %v1666_v35  }
  0x23   :  { %381 = vperm.xlu0 %1452, %v1633_v28  }
  0x24   :  { %1454 = vset.pattern.permute.xlu1 %v1491_v36 }
  0x25   :  { %493 = vperm.xlu1 %1454, %v1638_v29  }
  0x27   :  { %389 = vperm.xlu0 %1452, %v1648_v31  }
  0x29   :  { %501 = vperm.xlu1 %1454, %v1525_v1  }
  0x2b   :  { %1455 = vset.pattern.permute.xlu0 %v1491_v36 }
  0x2c   :  { %497 = vperm.xlu0 %1455, %v1653_v32  }
  0x2d   :  { %505 = vperm.xlu1 %1454, %v1579_v15  }
  0x30   :  { %525 = vperm.xlu0 %1455, %v1660_v33  }
  0x31   :  { %529 = vperm.xlu1 %1454, %v1633_v28  }
  0x34   :  { %533 = vperm.xlu0 %1455, %v1666_v35  }
  0x35   :  { %537 = vperm.xlu1 %1454, %v1648_v31  }
  0x38   :  { %1456 = vset.pattern.permute.xlu0 %v1492_v37 }
  0x39   :  { %1457 = vset.pattern.permute.xlu1 %v1492_v37  ;;  %641 = vperm.xlu0 %1456, %v1638_v29  }
  0x3a   :  { %645 = vperm.xlu1 %1457, %v1653_v32  }
  0x3d   :  { %653 = vperm.xlu0 %1456, %v1579_v15  }
  0x3e   :  { %649 = vperm.xlu1 %1457, %v1525_v1  }
  0x41   :  { %677 = vperm.xlu0 %1456, %v1633_v28  }
  0x42   :  { %673 = vperm.xlu1 %1457, %v1660_v33  }
  0x45   :  { %685 = vperm.xlu0 %1456, %v1648_v31  }
  0x46   :  { %681 = vperm.xlu1 %1457, %v1666_v35  }
  0x49   :  { %1459 = vset.pattern.permute.xlu0 %v1493_v38 }
  0x4a   :  { %1458 = vset.pattern.permute.xlu1 %v1493_v38  ;;  %793 = vperm.xlu0 %1459, %v1653_v32  }
  0x4b   :  { %789 = vperm.xlu1 %1458, %v1638_v29  }
  0x4e   :  { %821 = vperm.xlu0 %1459, %v1660_v33  }
  0x4f   :  { %797 = vperm.xlu1 %1458, %v1525_v1  }
  0x52   :  { %829 = vperm.xlu0 %1459, %v1666_v35  }
  0x53   :  { %801 = vperm.xlu1 %1458, %v1579_v15  }
  0x56   :  { %1460 = vset.pattern.permute.xlu0 %v1494_v39 }
  0x57   :  { %825 = vperm.xlu1 %1458, %v1633_v28   ;;  %937 = vperm.xlu0 %1460, %v1638_v29  }
  0x5b   :  { %833 = vperm.xlu1 %1458, %v1648_v31   ;;  %973 = vperm.xlu0 %1460, %v1633_v28  }
  0x5f   :  { %1461 = vset.pattern.permute.xlu1 %v1494_v39  ;;  %945 = vperm.xlu0 %1460, %v1525_v1  }
  0x60   :  { %941 = vperm.xlu1 %1461, %v1653_v32  }
  0x63   :  { %981 = vperm.xlu0 %1460, %v1648_v31  }
  0x64   :  { %969 = vperm.xlu1 %1461, %v1660_v33  }
  0x67   :  { %1467 = vset.pattern.permute.xlu0 %v1495_v40 }
  0x68   :  { %1462 = vset.pattern.permute.xlu1 %v1495_v40  ;;  %1089 = vperm.xlu0 %1467, %v1653_v32  }
  0x69   :  { %1085 = vperm.xlu1 %1462, %v1638_v29  }
  0x6c   :  { %1093 = vperm.xlu0 %1467, %v1525_v1  }
  0x6d   :  { %1117 = vperm.xlu1 %1462, %v1660_v33  }
  0x70   :  { %1097 = vperm.xlu0 %1467, %v1579_v15  }
  0x71   :  { %1121 = vperm.xlu1 %1462, %v1633_v28  }
  0x74   :  { %1469 = vset.pattern.permute.xlu0 %v1496_v41 }
  0x75   :  { %1463 = vset.pattern.permute.xlu1 %v1494_v39  ;;  %1237 = vperm.xlu0 %1469, %v1653_v32  }
  0x76   :  { %977 = vperm.xlu1 %1463, %v1666_v35  }
  0x79   :  { %1277 = vperm.xlu0 %1469, %v1648_v31  }
  0x7a   :  { %1464 = vset.pattern.permute.xlu1 %v1496_v41 }
  0x7b   :  { %1233 = vperm.xlu1 %1464, %v1638_v29  }
  0x7f   :  { %1265 = vperm.xlu1 %1464, %v1660_v33  }
  0x81   :  { %v1718_v42 = vpop.permute.xlu1 %200 }
  0x82   :  { %3110 = vst [vmem:[#allocation17_spill] sm:$0xff] %v1718_v42 }
  0x83   :  { %1269 = vperm.xlu1 %1464, %v1633_v28  }
  0x85   :  { %v1721_v43 = vpop.permute.xlu1 %205 }
  0x86   :  { %3111 = vst [vmem:[#allocation18_spill] sm:$0xff] %v1721_v43 }
  0x87   :  { %1465 = vset.pattern.permute.xlu1 %v1495_v40 }
  0x88   :  { %1125 = vperm.xlu1 %1465, %v1666_v35  }
  0x89   :  { %v1724_v44 = vpop.permute.xlu0 %190 }
  0x8a   :  { %3112 = vst [vmem:[#allocation19_spill] sm:$0xff] %v1724_v44  ;;  %v1726_v45 = vpop.permute.xlu1 %231 }
  0x8c   :  { %1466 = vset.pattern.permute.xlu1 %v1494_v39 }
  0x8d   :  { %949 = vperm.xlu1 %1466, %v1579_v15   ;;  %v1729_v46 = vpop.permute.xlu0 %195 }
  0x8e   :  { %3113 = vst [vmem:[#allocation20_spill] sm:$0xff] %v1729_v46  ;;  %v1731_v47 = vpop.permute.xlu1 %241  ;;  %v3156_v2 = vsub.f32 %v1729_v46, %v1560_v10 }
  0x91   :  { %1468 = vset.pattern.permute.xlu1 %v1496_v41  ;;  %v1733_v48 = vpop.permute.xlu0 %226 }
  0x92   :  { %1241 = vperm.xlu1 %1468, %v1525_v1  }
  0x93   :  { %v1736_v49 = vpop.permute.xlu1 %349 }
  0x94   :  { %3114 = vst [vmem:[#allocation21_spill] sm:$0xff] %v1736_v49 }
  0x95   :  { %v1738_v50 = vpop.permute.xlu0 %236 }
  0x96   :  { %1273 = vperm.xlu1 %1468, %v1666_v35  }
  0x97   :  { %v1741_v51 = vpop.permute.xlu1 %353 }
  0x98   :  { %3115 = vst [vmem:[#allocation22_spill] sm:$0xff] %v1741_v51 }
  0x9a   :  { %1470 = vset.pattern.permute.xlu1 %v1495_v40  ;;  %v1743_v52 = vpop.permute.xlu0 %345 }
  0x9b   :  { %3116 = vst [vmem:[#allocation23_spill] sm:$0xff] %v1743_v52  ;;  %v1745_v53 = vpop.permute.xlu1 %377  ;;  %1129 = vperm.xlu1 %1470, %v1648_v31  }
  0x9c   :  { %3117 = vst [vmem:[#allocation24_spill] sm:$0xff] %v1745_v53 }
  0x9e   :  { %v1748_v54 = vpop.permute.xlu0 %357 }
  0x9f   :  { %3118 = vst [vmem:[#allocation25_spill] sm:$0xff] %v1748_v54  ;;  %v1750_v55 = vpop.permute.xlu1 %385  ;;  %1471 = vset.pattern.permute.xlu1 %v1496_v41 }
  0xa0   :  { %3119 = vst [vmem:[#allocation26_spill] sm:$0xff] %v1750_v55  ;;  %1245 = vperm.xlu1 %1471, %v1579_v15   ;;  %v244_v15 = vlaneseq }
  0xa2   :  { %v1753_v56 = vpop.permute.xlu0 %381  ;;  %v1787_v26 = vshrl.u32 %v244_v15, 7 }
  0xa3   :  { %3120 = vst [vmem:[#allocation27_spill] sm:$0xff] %v1753_v56 }
  0xa4   :  { %v1755_v57 = vpop.permute.xlu1 %493  ;;  %v1792_v28 = vsub.s32 0, %v1787_v26  ;;  %v1797_v30 = vsub.s32 1, %v1787_v26  ;;  %v1800_v31 = vsub.s32 2, %v1787_v26  ;;  %v1803_v32 = vsub.s32 3, %v1787_v26 }
  0xa5   :  { %3121 = vst [vmem:[#allocation28_spill] sm:$0xff] %v1755_v57  ;;  %v1806_v33 = vsub.s32 4, %v1787_v26  ;;  %v1925_v41 = vsub.s32 5, %v1787_v26  ;;  %v1962_v37 = vsub.s32 6, %v1787_v26 }
  0xa6   :  { %v1757_v58 = vpop.permute.xlu0 %389  ;;  %3135 = vst [vmem:[#allocation42_spill] sm:$0xff] %v1792_v28  ;;  %3137 = vst [vmem:[#allocation44_spill] sm:$0xff] %v1797_v30 }
  0xa7   :  { %3122 = vst [vmem:[#allocation29_spill] sm:$0xff] %v1757_v58  ;;  %3138 = vst [vmem:[#allocation45_spill] sm:$0xff] %v1800_v31 }
  0xa8   :  { %v1759_v59 = vpop.permute.xlu1 %501  ;;  %3139 = vst [vmem:[#allocation46_spill] sm:$0xff] %v1803_v32  ;;  %3140 = vst [vmem:[#allocation47_spill] sm:$0xff] %v1806_v33 }
  0xa9   :  { %3123 = vst [vmem:[#allocation30_spill] sm:$0xff] %v1759_v59  ;;  %3145 = vst [vmem:[#allocation52_spill] sm:$0xff] %v1925_v41 }
  0xaa   :  { %3147 = vst [vmem:[#allocation54_spill] sm:$0xff] %v1962_v37  ;;  %v2007_v37 = vsub.s32 7, %v1787_v26 }
  0xab   :  { %v1761_v60 = vpop.permute.xlu0 %497 }
  0xac   :  { %3124 = vst [vmem:[#allocation31_spill] sm:$0xff] %v1761_v60  ;;  %v1763_v61 = vpop.permute.xlu1 %505  ;;  %3150 = vst [vmem:[#allocation57_spill] sm:$0xff] %v2007_v37 }
  0xad   :  { %3125 = vst [vmem:[#allocation32_spill] sm:$0xff] %v1763_v61 }
  0xaf   :  { %v1765_v62 = vpop.permute.xlu0 %525 }
  0xb0   :  { %3126 = vst [vmem:[#allocation33_spill] sm:$0xff] %v1765_v62  ;;  %v1767_v63 = vpop.permute.xlu1 %529 }
  0xb1   :  { %3127 = vst [vmem:[#allocation34_spill] sm:$0xff] %v1767_v63 }
  0xb3   :  { %v1769_v0 = vpop.permute.xlu0 %533 }
  0xb4   :  { %3128 = vst [vmem:[#allocation35_spill] sm:$0xff] %v1769_v0  ;;  %v1771_v1 = vpop.permute.xlu1 %537 }
  0xb5   :  { %3129 = vst [vmem:[#allocation36_spill] sm:$0xff] %v1771_v1 }
  0xb8   :  { %v1773_v4 = vpop.permute.xlu0 %641 }
  0xb9   :  { %v1775_v5 = vpop.permute.xlu1 %645 }
  0xba   :  { %3130 = vst [vmem:[#allocation37_spill] sm:$0xff] %v1775_v5 }
  0xbc   :  { %v1777_v9 = vpop.permute.xlu0 %653 }
  0xbd   :  { %v1779_v13 = vpop.permute.xlu1 %649 }
  0xc0   :  { %v1781_v14 = vpop.permute.xlu0 %677 }
  0xc1   :  { %3131 = vst [vmem:[#allocation38_spill] sm:$0xff] %v1781_v14  ;;  %v1783_v18 = vpop.permute.xlu1 %673 }
  0xc2   :  { %3132 = vst [vmem:[#allocation39_spill] sm:$0xff] %v1783_v18 }
  0xc4   :  { %v1785_v22 = vpop.permute.xlu0 %685 }
  0xc5   :  { %3133 = vst [vmem:[#allocation40_spill] sm:$0xff] %v1785_v22  ;;  %v1789_v27 = vpop.permute.xlu1 %681 }
  0xc6   :  { %3134 = vst [vmem:[#allocation41_spill] sm:$0xff] %v1789_v27 }
  0xc9   :  { %v1794_v29 = vpop.permute.xlu0 %793 }
  0xca   :  { %3136 = vst [vmem:[#allocation43_spill] sm:$0xff] %v1794_v29  ;;  %v1816_v38 = vpop.permute.xlu1 %789 }
  0xcd   :  { %v1842_v35 = vpop.permute.xlu0 %821 }
  0xce   :  { %3141 = vst [vmem:[#allocation48_spill] sm:$0xff] %v1842_v35  ;;  %v1852_v40 = vpop.permute.xlu1 %797 }
  0xd1   :  { %v1878_v22 = vpop.permute.xlu0 %829 }
  0xd2   :  { %3142 = vst [vmem:[#allocation49_spill] sm:$0xff] %v1878_v22  ;;  %v1888_v34 = vpop.permute.xlu1 %801 }
  0xd6   :  { %v1920_v27 = vpop.permute.xlu1 %825  ;;  %v1922_v36 = vpop.permute.xlu0 %937 }
  0xd7   :  { %3143 = vst [vmem:[#allocation50_spill] sm:$0xff] %v1920_v27  ;;  %3144 = vst [vmem:[#allocation51_spill] sm:$0xff] %v1922_v36 }
  0xda   :  { %v1957_v5 = vpop.permute.xlu1 %833  ;;  %v1959_v35 = vpop.permute.xlu0 %973 }
  0xdb   :  { %3146 = vst [vmem:[#allocation53_spill] sm:$0xff] %v1959_v35 }
  0xde   :  { %v1996_v29 = vpop.permute.xlu0 %945 }
  0xdf   :  { %3148 = vst [vmem:[#allocation55_spill] sm:$0xff] %v1996_v29  ;;  %v2002_v41 = vpop.permute.xlu1 %941 }
  0xe0   :  { %3149 = vst [vmem:[#allocation56_spill] sm:$0xff] %v2002_v41 }
  0xe1   :  { %v2011_v39 = vpop.f32.mrb[0].mxu0 }
  0xe2   :  { %3151 = vst [vmem:[#allocation58_spill] sm:$0xff] %v2011_v39  ;;  %v2013_v20 = vpop.f32.mrb[0].mxu1  ;;  %v247_v22 = vrot.slane %v2011_v39, %v1792_v28  ;;  %v395_v37 = vrot.slane %v2011_v39, %v1797_v30  ;;  %v2029_v6 = vpop.f32.mrb[1].mxu0  ;;  %v543_v36 = vrot.slane %v2011_v39, %v1800_v31  ;;  %v691_v26 = vrot.slane %v2011_v39, %v1803_v32 }
  0xe3   :  { %3152 = vst [vmem:[#allocation59_spill] sm:$0xff] %v2013_v20  ;;  %3153 = vst [vmem:[#allocation60_spill] sm:$0xff] %v2029_v6  ;;  %v2031_v27 = vpop.f32.mrb[1].mxu1  ;;  %v2041_v35 = vrot.slane %v2011_v39, %v1806_v33  ;;  %v3155_v39 = vsub.f32 %v1724_v44, %v1553_v8  ;;  %v3157_v33 = vsub.f32 %v1718_v42, %v1606_v21 }
  0xe4   :  { %3154 = vst [vmem:[#allocation61_spill] sm:$0xff] %v2031_v27  ;;  %v260_v29 = vmul.f32 %v247_v22, %v1733_v48  ;;  %v264_v19 = vmul.f32 %v247_v22, %v1726_v45  ;;  %v268_v17 = vmul.f32 %v247_v22, %v1738_v50  ;;  %v272_v27 = vmul.f32 %v247_v22, %v1731_v47 }
  0xe5   :  { %v408_v15 = vmul.f32 %v395_v37, %v1745_v53  ;;  %v412_v41 = vmul.f32 %v395_v37, %v1753_v56  ;;  %v416_v7 = vmul.f32 %v395_v37, %v1750_v55  ;;  %v420_v16 = vmul.f32 %v395_v37, %v1757_v58 }
  0xe6   :  { %v276_v3 = vadd.f32 %v260_v29, %v3155_v39  ;;  %v280_v6 = vadd.f32 %v264_v19, %v3156_v2  ;;  %v284_v22 = vadd.f32 %v268_v17, %v3157_v33  ;;  %v3158_v32 = vsub.f32 %v1721_v43, %v1613_v23 }
  0xe7   :  { %v3159_v55 = vsub.f32 %v1743_v52, %v1553_v8  ;;  %v3160_v58 = vsub.f32 %v1736_v49, %v1560_v10  ;;  %v3161_v39 = vsub.f32 %v1741_v51, %v1606_v21  ;;  %v3162_v19 = vsub.f32 %v1748_v54, %v1613_v23 }
  0xe8   :  { %v288_v56 = vadd.f32 %v272_v27, %v3158_v32  ;;  %v292_v33 = vand.u32 2147483647, %v276_v3  ;;  %v296_v25 = vand.u32 2147483647, %v280_v6  ;;  %v300_v43 = vand.u32 2147483647, %v284_v22 }
  0xe9   :  { %v424_v37 = vadd.f32 %v408_v15, %v3159_v55  ;;  %v428_v29 = vadd.f32 %v412_v41, %v3160_v58  ;;  %v432_v2 = vadd.f32 %v416_v7, %v3161_v39  ;;  %v436_v17 = vadd.f32 %v420_v16, %v3162_v19 }
  0xea   :  { %v556_v27 = vmul.f32 %v543_v36, %v1765_v62  ;;  %v304_v32 = vand.u32 2147483647, %v288_v56  ;;  %v560_v15 = vmul.f32 %v543_v36, %v1767_v63  ;;  %v308_v49 = vadd.f32 %v296_v25, %v292_v33 }
  0xeb   :  { %v440_v52 = vand.u32 2147483647, %v424_v37  ;;  %v444_v55 = vand.u32 2147483647, %v428_v29  ;;  %v448_v58 = vand.u32 2147483647, %v432_v2  ;;  %v564_v51 = vmul.f32 %v543_v36, %v1769_v0 }
  0xec   :  { %v452_v41 = vand.u32 2147483647, %v436_v17  ;;  %v568_v39 = vmul.f32 %v543_v36, %v1771_v1  ;;  %v3163_v3 = vsub.f32 %v1755_v57, %v1553_v8  ;;  %v3164_v16 = vsub.f32 %v1761_v60, %v1560_v10 }
  0xed   :  { %v456_v7 = vadd.f32 %v444_v55, %v440_v52  ;;  %v309_v22 = vadd.f32 %v308_v49, %v300_v43  ;;  %v3165_v37 = vsub.f32 %v1759_v59, %v1606_v21  ;;  %v704_v29 = vmul.f32 %v691_v26, %v1783_v18  ;;  %v3168_v43 = vld [vmem:[#allocation40_spill] sm:$0xff] }
  0xee   :  { %v572_v6 = vadd.f32 %v556_v27, %v3163_v3  ;;  %v576_v56 = vadd.f32 %v560_v15, %v3164_v16  ;;  %v708_v2 = vmul.f32 %v691_v26, %v1781_v14  ;;  %v3166_v36 = vsub.f32 %v1763_v61, %v1613_v23  ;;  %v3167_v3 = vld [vmem:[#allocation41_spill] sm:$0xff] }
  0xef   :  { %v580_v25 = vadd.f32 %v564_v51, %v3165_v37  ;;  %v457_v52 = vadd.f32 %v456_v7, %v448_v58  ;;  %v310_v27 = vadd.f32 %v309_v22, %v304_v32  ;;  %v712_v15 = vmul.f32 %v691_v26, %v3167_v3  ;;  %v3170_v7 = vld [vmem:[#allocation37_spill] sm:$0xff] }
  0xf0   :  { %v584_v19 = vadd.f32 %v568_v39, %v3166_v36  ;;  %v588_v17 = vand.u32 2147483647, %v572_v6  ;;  %v592_v33 = vand.u32 2147483647, %v576_v56  ;;  %v716_v49 = vmul.f32 %v691_v26, %v3168_v43 }
  0xf1   :  { %v596_v55 = vand.u32 2147483647, %v580_v25  ;;  %v458_v16 = vadd.f32 %v457_v52, %v452_v41  ;;  %v3169_v37 = vsub.f32 %v1773_v4, %v1553_v8  ;;  %v311_v58 = vrot.slane %v310_v27, 4  ;;  %v3174_v52 = vld [vmem:[#allocation48_spill] sm:$0xff] }
  0xf2   :  { %v600_v59 = vand.u32 2147483647, %v584_v19  ;;  %v604_v51 = vadd.f32 %v592_v33, %v588_v17  ;;  %v3171_v18 = vsub.f32 %v3170_v7, %v1560_v10  ;;  %v3172_v32 = vsub.f32 %v1779_v13, %v1606_v21 }
  0xf3   :  { %v720_v14 = vadd.f32 %v704_v29, %v3169_v37  ;;  %v3173_v56 = vsub.f32 %v1777_v9, %v1613_v23  ;;  %v459_v41 = vrot.slane %v458_v16, 4  ;;  %v852_v36 = vmul.f32 %v2041_v35, %v3174_v52 }
  0xf4   :  { %v724_v39 = vadd.f32 %v708_v2, %v3171_v18  ;;  %v728_v6 = vadd.f32 %v712_v15, %v3172_v32  ;;  %v605_v22 = vadd.f32 %v604_v51, %v596_v55  ;;  %v255_v19 = vrot.slane %v2013_v20, %v1792_v28  ;;  %v3176_v15 = vld [vmem:[#allocation50_spill] sm:$0xff]  ;;  %v3177_v55 = vld [vmem:[#allocation49_spill] sm:$0xff] }
  0xf5   :  { %v732_v26 = vadd.f32 %v716_v49, %v3173_v56  ;;  %v736_v25 = vand.u32 2147483647, %v720_v14  ;;  %v403_v18 = vrot.slane %v2013_v20, %v1797_v30  ;;  %v551_v2 = vrot.slane %v2013_v20, %v1800_v31 }
  0xf6   :  { %v740_v29 = vand.u32 2147483647, %v724_v39  ;;  %v2115_v17 = vadd.f32 %v311_v58, %v310_v27  ;;  %v2117_v33 = vadd.f32 %v605_v22, %v600_v59  ;;  %v856_v14 = vmul.f32 %v2041_v35, %v3176_v15  ;;  %v3180_v59 = vld [vmem:[#allocation43_spill] sm:$0xff] }
  0xf7   :  { %v860_v49 = vmul.f32 %v2041_v35, %v3177_v55  ;;  %v744_v51 = vand.u32 2147483647, %v728_v6  ;;  %v864_v39 = vmul.f32 %v2041_v35, %v1957_v5  ;;  %v3178_v32 = vsub.f32 %v1816_v38, %v1553_v8 }
  0xf8   :  { %3175 = vst [vmem:[#allocation41_spill] sm:$0xff] %v2115_v17  ;;  %v752_v37 = vadd.f32 %v740_v29, %v736_v25  ;;  %v2128_v31 = vadd.f32 %v459_v41, %v458_v16  ;;  %v748_v27 = vand.u32 2147483647, %v732_v26  ;;  %v3181_v58 = vsub.f32 %v3180_v59, %v1560_v10 }
  0xf9   :  { %v868_v56 = vadd.f32 %v852_v36, %v3178_v32  ;;  %v3182_v30 = vsub.f32 %v1852_v40, %v1606_v21  ;;  %v3183_v25 = vsub.f32 %v1888_v34, %v1613_v23  ;;  %v262_v8 = vmul.f32 %v255_v19, %v1733_v48 }
  0xfa   :  { %3179 = vst [vmem:[#allocation40_spill] sm:$0xff] %v2128_v31  ;;  %v872_v22 = vadd.f32 %v856_v14, %v3181_v58  ;;  %v753_v6 = vadd.f32 %v752_v37, %v744_v51  ;;  %v266_v36 = vmul.f32 %v255_v19, %v1726_v45  ;;  %v3185_v23 = vsub.f32 %v1724_v44, %v1565_v11 }
  0xfb   :  { %v876_v28 = vadd.f32 %v860_v49, %v3182_v30  ;;  %v880_v35 = vadd.f32 %v864_v39, %v3183_v25  ;;  %v884_v29 = vand.u32 2147483647, %v868_v56  ;;  %v270_v30 = vmul.f32 %v255_v19, %v1738_v50  ;;  %v3189_v25 = vld [vmem:[#allocation16_spill] sm:$0xff] }
  0xfc   :  { %v888_v41 = vand.u32 2147483647, %v872_v22  ;;  %v2143_v14 = vadd.f32 %v753_v6, %v748_v27  ;;  %v274_v49 = vmul.f32 %v255_v19, %v1731_v47  ;;  %v278_v37 = vadd.f32 %v262_v8, %v3185_v23  ;;  %v3188_v6 = vld [vmem:[#allocation18_spill] sm:$0xff] }
  0xfd   :  { %v892_v32 = vand.u32 2147483647, %v876_v28  ;;  %v3186_v39 = vsub.f32 %v1729_v46, %v1570_v12  ;;  %v410_v58 = vmul.f32 %v403_v18, %v1745_v53  ;;  %v896_v22 = vand.u32 2147483647, %v880_v35  ;;  %v3192_v23 = vld [vmem:[#allocation26_spill] sm:$0xff]  ;;  %v3194_v35 = vld [vmem:[#allocation23_spill] sm:$0xff] }
  0xfe   :  { %3184 = vst [vmem:[#allocation37_spill] sm:$0xff] %v2143_v14  ;;  %v900_v51 = vadd.f32 %v888_v41, %v884_v29  ;;  %v3187_v27 = vsub.f32 %v1718_v42, %v1618_v24  ;;  %v3190_v16 = vsub.f32 %v3188_v6, %v3189_v25  ;;  %v3191_v29 = vld [vmem:[#allocation27_spill] sm:$0xff]  ;;  %v294_v17 = vand.u32 2147483647, %v278_v37  ;;  %v3197_v6 = vld [vmem:[#allocation21_spill] sm:$0xff] }
  0xff   :  { %v282_v56 = vadd.f32 %v266_v36, %v3186_v39  ;;  %v414_v41 = vmul.f32 %v403_v18, %v3191_v29  ;;  %v418_v21 = vmul.f32 %v403_v18, %v3192_v23  ;;  %v3193_v39 = vld [vmem:[#allocation29_spill] sm:$0xff]  ;;  %v3195_v46 = vsub.f32 %v3194_v35, %v1565_v11 }
 0x100   :  { %v286_v28 = vadd.f32 %v270_v30, %v3187_v27  ;;  %v290_v19 = vadd.f32 %v274_v49, %v3190_v16  ;;  %v901_v26 = vadd.f32 %v900_v51, %v892_v32  ;;  %v422_v53 = vmul.f32 %v403_v18, %v3193_v39  ;;  %v3199_v32 = vld [vmem:[#allocation22_spill] sm:$0xff] }
 0x101   :  { %v298_v8 = vand.u32 2147483647, %v282_v56  ;;  %v426_v42 = vadd.f32 %v410_v58, %v3195_v46  ;;  %v3198_v16 = vsub.f32 %v3197_v6, %v1570_v12  ;;  %v3200_v51 = vsub.f32 %v3199_v32, %v1618_v24 }
 0x102   :  { %v302_v10 = vand.u32 2147483647, %v286_v28  ;;  %v306_v36 = vand.u32 2147483647, %v290_v19  ;;  %v2166_v30 = vadd.f32 %v901_v26, %v896_v22  ;;  %v3201_v56 = vsub.f32 %v1748_v54, %v3189_v25 }
 0x103   :  { %v326_v27 = vadd.f32 %v298_v8, %v294_v17  ;;  %v430_v49 = vadd.f32 %v414_v41, %v3198_v16  ;;  %v434_v37 = vadd.f32 %v418_v21, %v3200_v51  ;;  %v442_v18 = vand.u32 2147483647, %v426_v42 }
 0x104   :  { %3196 = vst [vmem:[#allocation50_spill] sm:$0xff] %v2166_v30  ;;  %v438_v28 = vadd.f32 %v422_v53, %v3201_v56  ;;  %v558_v19 = vmul.f32 %v551_v2, %v1765_v62  ;;  %v562_v46 = vmul.f32 %v551_v2, %v1767_v63  ;;  %v566_v22 = vmul.f32 %v551_v2, %v1769_v0  ;;  %v3204_v30 = vld [vmem:[#allocation30_spill] sm:$0xff] }
 0x105   :  { %v327_v26 = vadd.f32 %v326_v27, %v302_v10  ;;  %v446_v58 = vand.u32 2147483647, %v430_v49  ;;  %v450_v17 = vand.u32 2147483647, %v434_v37  ;;  %v570_v41 = vmul.f32 %v551_v2, %v1771_v1  ;;  %v3206_v49 = vld [vmem:[#allocation46_spill] sm:$0xff] }
 0x106   :  { %v454_v8 = vand.u32 2147483647, %v438_v28  ;;  %v3202_v21 = vsub.f32 %v1755_v57, %v1565_v11  ;;  %v3203_v53 = vsub.f32 %v1761_v60, %v1570_v12  ;;  %v3205_v10 = vsub.f32 %v3204_v30, %v1618_v24 }
 0x107   :  { %v328_v51 = vadd.f32 %v327_v26, %v306_v36  ;;  %v474_v56 = vadd.f32 %v446_v58, %v442_v18  ;;  %v699_v37 = vrot.slane %v2013_v20, %v3206_v49  ;;  %v3207_v2 = vsub.f32 %v1763_v61, %v3189_v25  ;;  %v3209_v18 = vld [vmem:[#allocation39_spill] sm:$0xff] }
 0x108   :  { %v574_v16 = vadd.f32 %v558_v19, %v3202_v21  ;;  %v578_v42 = vadd.f32 %v562_v46, %v3203_v53  ;;  %v582_v27 = vadd.f32 %v566_v22, %v3205_v10  ;;  %v3208_v19 = vld [vmem:[#allocation47_spill] sm:$0xff]  ;;  %v3210_v22 = vld [vmem:[#allocation38_spill] sm:$0xff] }
 0x109   :  { %v586_v28 = vadd.f32 %v570_v41, %v3207_v2  ;;  %v847_v21 = vrot.slane %v2013_v20, %v3208_v19  ;;  %v329_v60 = vrot.slane %v328_v51, 4  ;;  %v475_v46 = vadd.f32 %v474_v56, %v450_v17 }
 0x10a   :  { %v590_v1 = vand.u32 2147483647, %v574_v16  ;;  %v594_v57 = vand.u32 2147483647, %v578_v42  ;;  %v598_v36 = vand.u32 2147483647, %v582_v27  ;;  %v706_v26 = vmul.f32 %v699_v37, %v3209_v18 }
 0x10b   :  { %v602_v58 = vand.u32 2147483647, %v586_v28  ;;  %v710_v10 = vmul.f32 %v699_v37, %v3210_v22  ;;  %v714_v49 = vmul.f32 %v699_v37, %v3167_v3  ;;  %v2200_v30 = vadd.f32 %v329_v60, %v328_v51 }
 0x10c   :  { %v622_v53 = vadd.f32 %v594_v57, %v590_v1  ;;  %v476_v61 = vadd.f32 %v475_v46, %v454_v8  ;;  %v718_v41 = vmul.f32 %v699_v37, %v3168_v43  ;;  %v3212_v16 = vsub.f32 %v1773_v4, %v1565_v11 }
 0x10d   :  { %3211 = vst [vmem:[#allocation49_spill] sm:$0xff] %v2200_v30  ;;  %v3213_v17 = vsub.f32 %v3170_v7, %v1570_v12  ;;  %v3214_v57 = vsub.f32 %v1779_v13, %v1618_v24  ;;  %v854_v27 = vmul.f32 %v847_v21, %v3174_v52  ;;  %v3215_v8 = vrot.slane %v2117_v33, 4 }
 0x10e   :  { %v722_v42 = vadd.f32 %v706_v26, %v3212_v16  ;;  %v623_v2 = vadd.f32 %v622_v53, %v598_v36  ;;  %v477_v37 = vrot.slane %v476_v61, 4  ;;  %v3217_v36 = vsub.f32 %v1777_v9, %v3189_v25 }
 0x10f   :  { %v726_v56 = vadd.f32 %v710_v10, %v3213_v17  ;;  %v730_v1 = vadd.f32 %v714_v49, %v3214_v57  ;;  %v2217_v51 = vadd.f32 %v3215_v8, %v2117_v33  ;;  %v858_v49 = vmul.f32 %v847_v21, %v3176_v15 }
 0x110   :  { %v738_v28 = vand.u32 2147483647, %v722_v42  ;;  %v2219_v46 = vadd.f32 %v623_v2, %v602_v58  ;;  %v734_v26 = vadd.f32 %v718_v41, %v3217_v36  ;;  %v862_v17 = vmul.f32 %v847_v21, %v3177_v55 }
 0x111   :  { %3216 = vst [vmem:[#allocation43_spill] sm:$0xff] %v2217_v51  ;;  %v742_v53 = vand.u32 2147483647, %v726_v56  ;;  %v866_v33 = vmul.f32 %v847_v21, %v1957_v5  ;;  %v746_v57 = vand.u32 2147483647, %v730_v1  ;;  %v3218_v58 = vsub.f32 %v1816_v38, %v1565_v11  ;;  %v3222_v1 = vld [vmem:[#allocation42_spill] sm:$0xff] }
 0x112   :  { %v3219_v41 = vsub.f32 %v3180_v59, %v1570_v12  ;;  %v2235_v56 = vadd.f32 %v477_v37, %v476_v61  ;;  %v3220_v36 = vsub.f32 %v1852_v40, %v1618_v24  ;;  %v3221_v60 = vsub.f32 %v1888_v34, %v3189_v25  ;;  %v3230_v51 = vld [vmem:[#allocation44_spill] sm:$0xff]  ;;  %v3234_v24 = vld [vmem:[#allocation18_spill] sm:$0xff]  ;;  %v3235_v11 = vld [vmem:[#allocation11_spill] sm:$0xff] }
 0x113   :  { %v770_v8 = vadd.f32 %v742_v53, %v738_v28  ;;  %v870_v42 = vadd.f32 %v854_v27, %v3218_v58  ;;  %v3223_v28 = vld [vmem:[#allocation60_spill] sm:$0xff]  ;;  %v750_v16 = vand.u32 2147483647, %v734_v26  ;;  %v3225_v26 = vld [vmem:[#allocation2_spill] sm:$0xff]  ;;  %v3237_v12 = vld [vmem:[#allocation45_spill] sm:$0xff] }
 0x114   :  { %v874_v2 = vadd.f32 %v858_v49, %v3219_v41  ;;  %v878_v10 = vadd.f32 %v862_v17, %v3220_v36  ;;  %v882_v21 = vadd.f32 %v866_v33, %v3221_v60  ;;  %v251_v53 = vrot.slane %v3223_v28, %v3222_v1 }
 0x115   :  { %v771_v14 = vadd.f32 %v770_v8, %v746_v57  ;;  %v886_v27 = vand.u32 2147483647, %v870_v42  ;;  %v3226_v57 = vsub.f32 %v1724_v44, %v3225_v26  ;;  %v3227_v42 = vld [vmem:[#allocation20_spill] sm:$0xff]  ;;  %v399_v31 = vrot.slane %v3223_v28, %v3230_v51 }
 0x116   :  { %v890_v58 = vand.u32 2147483647, %v874_v2  ;;  %v894_v49 = vand.u32 2147483647, %v878_v10  ;;  %v261_v61 = vmul.f32 %v251_v53, %v1733_v48  ;;  %v265_v37 = vmul.f32 %v251_v53, %v1726_v45  ;;  %v3228_v2 = vld [vmem:[#allocation3_spill] sm:$0xff]  ;;  %v3238_v44 = vld [vmem:[#allocation24_spill] sm:$0xff] }
 0x117   :  { %v2248_v41 = vadd.f32 %v771_v14, %v750_v16  ;;  %v269_v25 = vmul.f32 %v251_v53, %v1738_v50  ;;  %v273_v60 = vmul.f32 %v251_v53, %v1731_v47  ;;  %v898_v33 = vand.u32 2147483647, %v882_v21  ;;  %v3231_v14 = vld [vmem:[#allocation17_spill] sm:$0xff]  ;;  %v3232_v16 = vld [vmem:[#allocation10_spill] sm:$0xff] }
 0x118   :  { %v918_v17 = vadd.f32 %v890_v58, %v886_v27  ;;  %v277_v8 = vadd.f32 %v261_v61, %v3226_v57  ;;  %v3229_v36 = vsub.f32 %v3227_v42, %v3228_v2  ;;  %v3233_v27 = vsub.f32 %v3231_v14, %v3232_v16 }
 0x119   :  { %3224 = vst [vmem:[#allocation16_spill] sm:$0xff] %v2248_v41  ;;  %v3236_v53 = vsub.f32 %v3234_v24, %v3235_v11  ;;  %v547_v20 = vrot.slane %v3223_v28, %v3237_v12  ;;  %v409_v42 = vmul.f32 %v399_v31, %v3238_v44  ;;  %v417_v14 = vmul.f32 %v399_v31, %v3192_v23 }
 0x11a   :  { %v281_v10 = vadd.f32 %v265_v37, %v3229_v36  ;;  %v919_v30 = vadd.f32 %v918_v17, %v894_v49  ;;  %v285_v58 = vadd.f32 %v269_v25, %v3233_v27  ;;  %v293_v61 = vand.u32 2147483647, %v277_v8 }
 0x11b   :  { %v289_v21 = vadd.f32 %v273_v60, %v3236_v53  ;;  %v413_v37 = vmul.f32 %v399_v31, %v3191_v29  ;;  %v421_v27 = vmul.f32 %v399_v31, %v3193_v39  ;;  %v3240_v60 = vsub.f32 %v3194_v35, %v3225_v26 }
 0x11c   :  { %v297_v57 = vand.u32 2147483647, %v281_v10  ;;  %v2270_v36 = vadd.f32 %v919_v30, %v898_v33  ;;  %v301_v49 = vand.u32 2147483647, %v285_v58  ;;  %v3241_v8 = vsub.f32 %v3197_v6, %v3228_v2  ;;  %v3244_v6 = vld [vmem:[#allocation36_spill] sm:$0xff] }
 0x11d   :  { %v305_v17 = vand.u32 2147483647, %v289_v21  ;;  %v425_v53 = vadd.f32 %v409_v42, %v3240_v60  ;;  %v3242_v24 = vsub.f32 %v3199_v32, %v3232_v16  ;;  %v557_v33 = vmul.f32 %v547_v20, %v1765_v62 }
 0x11e   :  { %3239 = vst [vmem:[#allocation27_spill] sm:$0xff] %v2270_v36  ;;  %v317_v25 = vadd.f32 %v297_v57, %v293_v61  ;;  %v429_v10 = vadd.f32 %v413_v37, %v3241_v8  ;;  %v561_v58 = vmul.f32 %v547_v20, %v1767_v63  ;;  %v565_v21 = vmul.f32 %v547_v20, %v1769_v0  ;;  %v3245_v8 = vld [vmem:[#allocation28_spill] sm:$0xff] }
 0x11f   :  { %v433_v30 = vadd.f32 %v417_v14, %v3242_v24  ;;  %v3243_v31 = vsub.f32 %v1748_v54, %v3235_v11  ;;  %v441_v42 = vand.u32 2147483647, %v425_v53  ;;  %v569_v37 = vmul.f32 %v547_v20, %v3244_v6  ;;  %v3247_v14 = vld [vmem:[#allocation31_spill] sm:$0xff]  ;;  %v3251_v53 = vld [vmem:[#allocation32_spill] sm:$0xff]  ;;  %v3253_v6 = vld [vmem:[#allocation46_spill] sm:$0xff] }
 0x120   :  { %v318_v61 = vadd.f32 %v317_v25, %v301_v49  ;;  %v445_v60 = vand.u32 2147483647, %v429_v10  ;;  %v3246_v32 = vsub.f32 %v3245_v8, %v3225_v26  ;;  %v3248_v62 = vsub.f32 %v3247_v14, %v3228_v2  ;;  %v3249_v25 = vld [vmem:[#allocation30_spill] sm:$0xff] }
 0x121   :  { %v437_v57 = vadd.f32 %v421_v27, %v3243_v31  ;;  %v449_v36 = vand.u32 2147483647, %v433_v30  ;;  %v3250_v54 = vsub.f32 %v3249_v25, %v3232_v16  ;;  %v3252_v10 = vsub.f32 %v3251_v53, %v3235_v11 }
 0x122   :  { %v573_v24 = vadd.f32 %v557_v33, %v3246_v32  ;;  %v577_v63 = vadd.f32 %v561_v58, %v3248_v62  ;;  %v319_v35 = vadd.f32 %v318_v61, %v305_v17  ;;  %v465_v49 = vadd.f32 %v445_v60, %v441_v42 }
 0x123   :  { %v453_v0 = vand.u32 2147483647, %v437_v57  ;;  %v581_v27 = vadd.f32 %v565_v21, %v3250_v54  ;;  %v585_v30 = vadd.f32 %v569_v37, %v3252_v10  ;;  %v695_v32 = vrot.slane %v3223_v28, %v3253_v6 }
 0x124   :  { %v589_v20 = vand.u32 2147483647, %v573_v24  ;;  %v593_v31 = vand.u32 2147483647, %v577_v63  ;;  %v320_v33 = vrot.slane %v319_v35, 4  ;;  %v466_v8 = vadd.f32 %v465_v49, %v449_v36 }
 0x125   :  { %v597_v14 = vand.u32 2147483647, %v581_v27  ;;  %v843_v62 = vrot.slane %v3223_v28, %v3208_v19  ;;  %v601_v17 = vand.u32 2147483647, %v585_v30  ;;  %v705_v61 = vmul.f32 %v695_v32, %v3209_v18 }
 0x126   :  { %v613_v58 = vadd.f32 %v593_v31, %v589_v20  ;;  %v709_v54 = vmul.f32 %v695_v32, %v3210_v22  ;;  %v321_v21 = vadd.f32 %v320_v33, %v319_v35  ;;  %v467_v57 = vadd.f32 %v466_v8, %v453_v0 }
 0x127   :  { %v713_v42 = vmul.f32 %v695_v32, %v3167_v3  ;;  %v717_v63 = vmul.f32 %v695_v32, %v3168_v43  ;;  %v3254_v36 = vsub.f32 %v1773_v4, %v3225_v26  ;;  %v3255_v24 = vsub.f32 %v3170_v7, %v3228_v2 }
 0x128   :  { %v614_v60 = vadd.f32 %v613_v58, %v597_v14  ;;  %v853_v27 = vmul.f32 %v843_v62, %v3174_v52  ;;  %v322_v10 = vrot.slane %v321_v21, 2  ;;  %v468_v30 = vrot.slane %v467_v57, 4 }
 0x129   :  { %v721_v37 = vadd.f32 %v705_v61, %v3254_v36  ;;  %v725_v49 = vadd.f32 %v709_v54, %v3255_v24  ;;  %v3256_v0 = vsub.f32 %v1779_v13, %v3232_v16  ;;  %v3257_v8 = vsub.f32 %v1777_v9, %v3235_v11 }
 0x12a   :  { %v615_v20 = vadd.f32 %v614_v60, %v601_v17  ;;  %v857_v33 = vmul.f32 %v843_v62, %v3176_v15  ;;  %v323_v58 = vadd.f32 %v322_v10, %v321_v21  ;;  %v469_v61 = vadd.f32 %v468_v30, %v467_v57 }
 0x12b   :  { %v729_v35 = vadd.f32 %v713_v42, %v3256_v0  ;;  %v733_v14 = vadd.f32 %v717_v63, %v3257_v8  ;;  %v737_v31 = vand.u32 2147483647, %v721_v37  ;;  %v741_v32 = vand.u32 2147483647, %v725_v49 }
 0x12c   :  { %v616_v24 = vrot.slane %v615_v20, 4  ;;  %v861_v52 = vmul.f32 %v843_v62, %v3177_v55  ;;  %v865_v19 = vmul.f32 %v843_v62, %v1957_v5  ;;  %v324_v42 = vrot.slane %v323_v58, 1 }
 0x12d   :  { %v745_v54 = vand.u32 2147483647, %v729_v35  ;;  %v749_v36 = vand.u32 2147483647, %v733_v14  ;;  %v761_v28 = vadd.f32 %v741_v32, %v737_v31  ;;  %v470_v0 = vrot.slane %v469_v61, 2 }
 0x12e   :  { %v3258_v63 = vsub.f32 %v1816_v38, %v3225_v26  ;;  %v3259_v60 = vsub.f32 %v3180_v59, %v3228_v2  ;;  %v617_v21 = vadd.f32 %v616_v24, %v615_v20  ;;  %v3260_v49 = vsub.f32 %v1852_v40, %v3232_v16  ;;  %v3263_v24 = vld [vmem:[#allocation61_spill] sm:$0xff] }
 0x12f   :  { %v762_v57 = vadd.f32 %v761_v28, %v745_v54  ;;  %v3261_v30 = vsub.f32 %v1888_v34, %v3235_v11  ;;  %v471_v8 = vadd.f32 %v470_v0, %v469_v61  ;;  %v259_v11 = vrot.slane %v3263_v24, %v3222_v1 }
 0x130   :  { %v869_v17 = vadd.f32 %v853_v27, %v3258_v63  ;;  %v873_v37 = vadd.f32 %v857_v33, %v3259_v60  ;;  %v877_v10 = vadd.f32 %v861_v52, %v3260_v49  ;;  %v3262_v27 = vrot.slane %v2219_v46, 4 }
 0x131   :  { %v881_v62 = vadd.f32 %v865_v19, %v3261_v30  ;;  %v618_v20 = vrot.slane %v617_v21, 2  ;;  %v763_v33 = vadd.f32 %v762_v57, %v749_v36  ;;  %v407_v19 = vrot.slane %v3263_v24, %v3230_v51 }
 0x132   :  { %v885_v14 = vand.u32 2147483647, %v869_v17  ;;  %v889_v31 = vand.u32 2147483647, %v873_v37  ;;  %v2342_v32 = vadd.f32 %v3262_v27, %v2219_v46  ;;  %v893_v54 = vand.u32 2147483647, %v877_v10 }
 0x133   :  { %v2349_v61 = vadd.f32 %v324_v42, %v323_v58  ;;  %v472_v0 = vrot.slane %v471_v8, 1  ;;  %v2351_v63 = vadd.f32 %v618_v20, %v617_v21  ;;  %v897_v17 = vand.u32 2147483647, %v881_v62  ;;  %v3265_v42 = vld [vmem:[#allocation19_spill] sm:$0xff]  ;;  %v3266_v21 = vld [vmem:[#allocation4_spill] sm:$0xff] }
 0x134   :  { %v909_v52 = vadd.f32 %v889_v31, %v885_v14  ;;  %v764_v46 = vrot.slane %v763_v33, 4  ;;  %v263_v37 = vmul.f32 %v259_v11, %v1733_v48  ;;  %v267_v36 = vmul.f32 %v259_v11, %v1726_v45  ;;  %v3268_v62 = vld [vmem:[#allocation20_spill] sm:$0xff]  ;;  %v3269_v14 = vld [vmem:[#allocation5_spill] sm:$0xff] }
 0x135   :  { %3264 = vst [vmem:[#allocation26_spill] sm:$0xff] %v2349_v61  ;;  %v271_v57 = vmul.f32 %v259_v11, %v1738_v50  ;;  %v275_v49 = vmul.f32 %v259_v11, %v1731_v47  ;;  %v411_v1 = vmul.f32 %v407_v19, %v3238_v44  ;;  %v555_v51 = vrot.slane %v3263_v24, %v3237_v12  ;;  %v3271_v50 = vld [vmem:[#allocation17_spill] sm:$0xff]  ;;  %v3272_v27 = vld [vmem:[#allocation12_spill] sm:$0xff]  ;;  %v3274_v44 = vld [vmem:[#allocation18_spill] sm:$0xff] }
 0x136   :  { %v910_v60 = vadd.f32 %v909_v52, %v893_v54  ;;  %v3267_v10 = vsub.f32 %v3265_v42, %v3266_v21  ;;  %v3270_v48 = vsub.f32 %v3268_v62, %v3269_v14  ;;  %v415_v45 = vmul.f32 %v407_v19, %v3191_v29  ;;  %v3275_v54 = vld [vmem:[#allocation13_spill] sm:$0xff]  ;;  %v3278_v62 = vld [vmem:[#allocation23_spill] sm:$0xff] }
 0x137   :  { %v3273_v47 = vsub.f32 %v3271_v50, %v3272_v27  ;;  %v3276_v52 = vsub.f32 %v3274_v44, %v3275_v54  ;;  %v419_v11 = vmul.f32 %v407_v19, %v3192_v23  ;;  %v2381_v29 = vadd.f32 %v764_v46, %v763_v33  ;;  %v3280_v50 = vld [vmem:[#allocation21_spill] sm:$0xff]  ;;  %v3332_v61 = vld [vmem:[#allocation55_spill] sm:$0xff] }
 0x138   :  { %v2360_v58 = vadd.f32 %v910_v60, %v897_v17  ;;  %v279_v30 = vadd.f32 %v263_v37, %v3267_v10  ;;  %v283_v31 = vadd.f32 %v267_v36, %v3270_v48  ;;  %v703_v17 = vrot.slane %v3263_v24, %v3253_v6  ;;  %v3282_v6 = vld [vmem:[#allocation22_spill] sm:$0xff] }
 0x139   :  { %v287_v20 = vadd.f32 %v271_v57, %v3273_v47  ;;  %v291_v12 = vadd.f32 %v275_v49, %v3276_v52  ;;  %v2378_v60 = vadd.f32 %v472_v0, %v471_v8  ;;  %v423_v36 = vmul.f32 %v407_v19, %v3193_v39  ;;  %v2395_v19 = vpop.permute.xlu1 %969  ;;  %v3287_v52 = vld [vmem:[#allocation34_spill] sm:$0xff] }
 0x13a   :  { %v295_v37 = vand.u32 2147483647, %v279_v30  ;;  %v299_v42 = vand.u32 2147483647, %v283_v31  ;;  %v3279_v57 = vsub.f32 %v3278_v62, %v3266_v21  ;;  %v3281_v49 = vsub.f32 %v3280_v50, %v3269_v14  ;;  %v3284_v30 = vld [vmem:[#allocation25_spill] sm:$0xff] }
 0x13b   :  { %3277 = vst [vmem:[#allocation29_spill] sm:$0xff] %v2378_v60  ;;  %v303_v10 = vand.u32 2147483647, %v287_v20  ;;  %v307_v47 = vand.u32 2147483647, %v291_v12  ;;  %v3283_v8 = vsub.f32 %v3282_v6, %v3272_v27  ;;  %v3285_v39 = vsub.f32 %v3284_v30, %v3275_v54  ;;  %v3286_v20 = vld [vmem:[#allocation33_spill] sm:$0xff] }
 0x13c   :  { %v427_v48 = vadd.f32 %v411_v1, %v3279_v57  ;;  %v431_v23 = vadd.f32 %v415_v45, %v3281_v49  ;;  %v335_v44 = vadd.f32 %v299_v42, %v295_v37  ;;  %v559_v1 = vmul.f32 %v555_v51, %v3286_v20  ;;  %v3288_v37 = vld [vmem:[#allocation35_spill] sm:$0xff]  ;;  %v3289_v49 = vld [vmem:[#allocation36_spill] sm:$0xff]  ;;  %v3333_v60 = vld [vmem:[#allocation14_spill] sm:$0xff] }
 0x13d   :  { %v435_v0 = vadd.f32 %v419_v11, %v3283_v8  ;;  %v439_v33 = vadd.f32 %v423_v36, %v3285_v39  ;;  %v563_v62 = vmul.f32 %v555_v51, %v3287_v52  ;;  %v567_v42 = vmul.f32 %v555_v51, %v3288_v37  ;;  %v3290_v6 = vld [vmem:[#allocation28_spill] sm:$0xff]  ;;  %v3292_v30 = vld [vmem:[#allocation31_spill] sm:$0xff] }
 0x13e   :  { %v443_v46 = vand.u32 2147483647, %v427_v48  ;;  %v447_v31 = vand.u32 2147483647, %v431_v23  ;;  %v336_v57 = vadd.f32 %v335_v44, %v303_v10  ;;  %v571_v11 = vmul.f32 %v555_v51, %v3289_v49 }
 0x13f   :  { %v451_v45 = vand.u32 2147483647, %v435_v0  ;;  %v455_v12 = vand.u32 2147483647, %v439_v33  ;;  %v3291_v8 = vsub.f32 %v3290_v6, %v3266_v21  ;;  %v3293_v48 = vsub.f32 %v3292_v30, %v3269_v14 }
 0x140   :  { %v483_v50 = vadd.f32 %v447_v31, %v443_v46  ;;  %v337_v39 = vadd.f32 %v336_v57, %v307_v47  ;;  %v3294_v20 = vsub.f32 %v3249_v25, %v3272_v27  ;;  %v707_v44 = vmul.f32 %v703_v17, %v3209_v18  ;;  %v2418_v25 = vpop.permute.xlu1 %1085 }
 0x141   :  { %v575_v36 = vadd.f32 %v559_v1, %v3291_v8  ;;  %v579_v23 = vadd.f32 %v563_v62, %v3293_v48  ;;  %v711_v0 = vmul.f32 %v703_v17, %v3210_v22  ;;  %v3295_v51 = vsub.f32 %v3251_v53, %v3275_v54 }
 0x142   :  { %v583_v10 = vadd.f32 %v567_v42, %v3294_v20  ;;  %v484_v33 = vadd.f32 %v483_v50, %v451_v45  ;;  %v912_v52 = vrot.slane %v2360_v58, 4  ;;  %v338_v37 = vrot.slane %v337_v39, 4 }
 0x143   :  { %v587_v46 = vadd.f32 %v571_v11, %v3295_v51  ;;  %v591_v31 = vand.u32 2147483647, %v575_v36  ;;  %v595_v1 = vand.u32 2147483647, %v579_v23  ;;  %v715_v47 = vmul.f32 %v703_v17, %v3167_v3 }
 0x144   :  { %v719_v62 = vmul.f32 %v703_v17, %v3168_v43  ;;  %v485_v57 = vadd.f32 %v484_v33, %v455_v12  ;;  %v599_v18 = vand.u32 2147483647, %v583_v10  ;;  %v3296_v22 = vsub.f32 %v1773_v4, %v3266_v21  ;;  %v3299_v12 = vld [vmem:[#allocation47_spill] sm:$0xff]  ;;  %v3301_v10 = vld [vmem:[#allocation48_spill] sm:$0xff] }
 0x145   :  { %v631_v42 = vadd.f32 %v595_v1, %v591_v31  ;;  %v339_v53 = vadd.f32 %v338_v37, %v337_v39  ;;  %v603_v50 = vand.u32 2147483647, %v587_v46  ;;  %v3297_v49 = vsub.f32 %v3170_v7, %v3269_v14  ;;  %v2441_v37 = vpop.permute.xlu1 %1117 }
 0x146   :  { %v723_v45 = vadd.f32 %v707_v44, %v3296_v22  ;;  %v3298_v3 = vsub.f32 %v1779_v13, %v3272_v27  ;;  %v486_v43 = vrot.slane %v485_v57, 4  ;;  %v851_v36 = vrot.slane %v3263_v24, %v3299_v12  ;;  %v3303_v13 = vld [vmem:[#allocation58_spill] sm:$0xff] }
 0x147   :  { %v727_v11 = vadd.f32 %v711_v0, %v3297_v49  ;;  %v632_v17 = vadd.f32 %v631_v42, %v599_v18  ;;  %v340_v30 = vrot.slane %v339_v53, 2  ;;  %v3300_v4 = vsub.f32 %v1777_v9, %v3275_v54  ;;  %v3302_v0 = vld [vmem:[#allocation52_spill] sm:$0xff] }
 0x148   :  { %v731_v6 = vadd.f32 %v715_v47, %v3298_v3  ;;  %v739_v8 = vand.u32 2147483647, %v723_v45  ;;  %v487_v20 = vadd.f32 %v486_v43, %v485_v57  ;;  %v855_v44 = vmul.f32 %v851_v36, %v3301_v10 }
 0x149   :  { %v735_v48 = vadd.f32 %v719_v62, %v3300_v4  ;;  %v743_v23 = vand.u32 2147483647, %v727_v11  ;;  %v633_v7 = vadd.f32 %v632_v17, %v603_v50  ;;  %v2437_v33 = vrot.slane %v3303_v13, %v3302_v0 }
 0x14a   :  { %v747_v39 = vand.u32 2147483647, %v731_v6  ;;  %v341_v51 = vadd.f32 %v340_v30, %v339_v53  ;;  %v859_v31 = vmul.f32 %v851_v36, %v3176_v15  ;;  %v863_v1 = vmul.f32 %v851_v36, %v3177_v55 }
 0x14b   :  { %v779_v46 = vadd.f32 %v743_v23, %v739_v8  ;;  %v488_v9 = vrot.slane %v487_v20, 2  ;;  %v634_v47 = vrot.slane %v633_v7, 4  ;;  %v867_v62 = vmul.f32 %v851_v36, %v1957_v5 }
 0x14c   :  { %v3304_v57 = vsub.f32 %v1816_v38, %v3266_v21  ;;  %v751_v42 = vand.u32 2147483647, %v735_v48  ;;  %v3305_v45 = vsub.f32 %v3180_v59, %v3269_v14  ;;  %v3306_v15 = vsub.f32 %v1852_v40, %v3272_v27  ;;  %v3309_v40 = vld [vmem:[#allocation60_spill] sm:$0xff] }
 0x14d   :  { %v780_v22 = vadd.f32 %v779_v46, %v747_v39  ;;  %v489_v50 = vadd.f32 %v488_v9, %v487_v20  ;;  %v635_v49 = vadd.f32 %v634_v47, %v633_v7  ;;  %v3307_v11 = vsub.f32 %v1888_v34, %v3275_v54  ;;  %v3310_v34 = vld [vmem:[#allocation59_spill] sm:$0xff]  ;;  %v3311_v39 = vld [vmem:[#allocation53_spill] sm:$0xff] }
 0x14e   :  { %v871_v18 = vadd.f32 %v855_v44, %v3304_v57  ;;  %v875_v53 = vadd.f32 %v859_v31, %v3305_v45  ;;  %v879_v55 = vadd.f32 %v863_v1, %v3306_v15  ;;  %v2458_v6 = vadd.f32 %v912_v52, %v2360_v58  ;;  %v2472_v58 = vpop.permute.xlu1 %1121  ;;  %v3313_v31 = vld [vmem:[#allocation56_spill] sm:$0xff]  ;;  %v3314_v1 = vld [vmem:[#allocation7_spill] sm:$0xff] }
 0x14f   :  { %v883_v5 = vadd.f32 %v867_v62, %v3307_v11  ;;  %v781_v43 = vadd.f32 %v780_v22, %v751_v42  ;;  %v342_v59 = vrot.slane %v341_v51, 1  ;;  %v490_v8 = vrot.slane %v489_v50, 1 }
 0x150   :  { %v887_v3 = vand.u32 2147483647, %v871_v18  ;;  %3308 = vst [vmem:[#allocation39_spill] sm:$0xff] %v2458_v6  ;;  %v891_v17 = vand.u32 2147483647, %v875_v53  ;;  %v2462_v36 = vrot.slane %v3309_v40, %v3302_v0  ;;  %v2466_v54 = vrot.slane %v3310_v34, %v3302_v0  ;;  %v3318_v53 = vld [vmem:[#allocation9_spill] sm:$0xff] }
 0x151   :  { %v895_v12 = vand.u32 2147483647, %v879_v55  ;;  %v782_v30 = vrot.slane %v781_v43, 4  ;;  %v2470_v48 = vrot.slane %v3263_v24, %v3302_v0  ;;  %v636_v52 = vrot.slane %v635_v49, 2 }
 0x152   :  { %v927_v4 = vadd.f32 %v891_v17, %v887_v3  ;;  %v899_v23 = vand.u32 2147483647, %v883_v5  ;;  %v1004_v20 = vmul.f32 %v2437_v33, %v3311_v39  ;;  %v1005_v7 = vmul.f32 %v2462_v36, %v3311_v39 }
 0x153   :  { %v2478_v10 = vadd.f32 %v782_v30, %v781_v43  ;;  %v1006_v46 = vmul.f32 %v2466_v54, %v3311_v39  ;;  %v1007_v0 = vmul.f32 %v2470_v48, %v3311_v39  ;;  %v3315_v9 = vsub.f32 %v3313_v31, %v3314_v1  ;;  %v3322_v30 = vld [vmem:[#allocation51_spill] sm:$0xff] }
 0x154   :  { %v928_v44 = vadd.f32 %v927_v4, %v895_v12  ;;  %v3316_v62 = vsub.f32 %v3313_v31, %v3228_v2  ;;  %v1000_v18 = vmul.f32 %v2437_v33, %v2395_v19  ;;  %v1001_v42 = vmul.f32 %v2462_v36, %v2395_v19  ;;  %v3323_v4 = vld [vmem:[#allocation6_spill] sm:$0xff] }
 0x155   :  { %3312 = vst [vmem:[#allocation38_spill] sm:$0xff] %v2478_v10  ;;  %v1020_v47 = vadd.f32 %v1004_v20, %v3315_v9  ;;  %v2494_v22 = vadd.f32 %v342_v59, %v341_v51  ;;  %v3319_v15 = vsub.f32 %v3313_v31, %v3318_v53  ;;  %v3320_v11 = vsub.f32 %v3313_v31, %v3269_v14  ;;  %v2514_v14 = vpop.permute.xlu1 %977  ;;  %v2530_v9 = vld [vmem:[%s2964_s3] sm:$0xff] }
 0x156   :  { %v1021_v57 = vadd.f32 %v1005_v7, %v3316_v62  ;;  %v929_v45 = vadd.f32 %v928_v44, %v899_v23  ;;  %v2502_v3 = vadd.f32 %v490_v8, %v489_v50  ;;  %v2504_v2 = vadd.f32 %v636_v52, %v635_v49  ;;  %v3326_v52 = vld [vmem:[#allocation8_spill] sm:$0xff]  ;;  %v3330_v53 = vld [vmem:[#allocation54_spill] sm:$0xff] }
 0x157   :  { %3317 = vst [vmem:[#allocation42_spill] sm:$0xff] %v2494_v22  ;;  %v1022_v55 = vadd.f32 %v1006_v46, %v3319_v15  ;;  %v1023_v5 = vadd.f32 %v1007_v0, %v3320_v11  ;;  %v1002_v43 = vmul.f32 %v2466_v54, %v2395_v19  ;;  %v1003_v51 = vmul.f32 %v2470_v48, %v2395_v19  ;;  %v2525_v46 = vpop.permute.xlu0 %981 }
 0x158   :  { %3321 = vst [vmem:[#allocation2_spill] sm:$0xff] %v2502_v3  ;;  %v930_v59 = vrot.slane %v929_v45, 4  ;;  %v1036_v12 = vand.u32 2147483647, %v1020_v47  ;;  %v3324_v23 = vsub.f32 %v3322_v30, %v3323_v4  ;;  %v1037_v50 = vand.u32 2147483647, %v1021_v57 }
 0x159   :  { %v3325_v49 = vsub.f32 %v3322_v30, %v3225_v26  ;;  %v3327_v20 = vsub.f32 %v3322_v30, %v3326_v52  ;;  %v3328_v19 = vsub.f32 %v3322_v30, %v3266_v21  ;;  %v1038_v0 = vand.u32 2147483647, %v1022_v55  ;;  %v2539_v21 = vld [vmem:[%s2964_s3 + $0x8] sm:$0xff] }
 0x15a   :  { %v1016_v39 = vadd.f32 %v1000_v18, %v3324_v23  ;;  %v1039_v31 = vand.u32 2147483647, %v1023_v5  ;;  %v1100_v26 = vsub.f32 %v2418_v25, %v2530_v9  ;;  %v2534_v47 = vadd.f32 %v930_v59, %v929_v45  ;;  %v2560_v5 = vld [vmem:[%s2964_s3 + $0x10] sm:$0xff] }
 0x15b   :  { %v1017_v8 = vadd.f32 %v1001_v42, %v3325_v49  ;;  %v1018_v7 = vadd.f32 %v1002_v43, %v3327_v20  ;;  %v1019_v44 = vadd.f32 %v1003_v51, %v3328_v19  ;;  %v1101_v42 = vsub.f32 %v2418_v25, %v2539_v21  ;;  %v2567_v51 = vld [vmem:[%s2964_s3 + $0x18] sm:$0xff]  ;;  %v2581_v49 = vpop.permute.xlu1 %1233 }
 0x15c   :  { %v1032_v1 = vand.u32 2147483647, %v1016_v39  ;;  %3329 = vst [vmem:[#allocation3_spill] sm:$0xff] %v2534_v47  ;;  %v2545_v15 = vrot.slane %v3303_v13, %v3330_v53  ;;  %v2549_v55 = vrot.slane %v3309_v40, %v3330_v53  ;;  %v2553_v45 = vrot.slane %v3310_v34, %v3330_v53  ;;  %v3336_v47 = vld [vmem:[#allocation15_spill] sm:$0xff] }
 0x15d   :  { %v1033_v62 = vand.u32 2147483647, %v1017_v8  ;;  %v1034_v57 = vand.u32 2147483647, %v1018_v7  ;;  %v1035_v18 = vand.u32 2147483647, %v1019_v44  ;;  %v1102_v43 = vsub.f32 %v2418_v25, %v2560_v5 }
 0x15e   :  { %v2555_v11 = vadd.f32 %v1036_v12, %v1032_v1  ;;  %v1103_v59 = vsub.f32 %v2418_v25, %v2567_v51  ;;  %v2573_v12 = vrot.slane %v3263_v24, %v3330_v53  ;;  %v1148_v4 = vmul.f32 %v2545_v15, %v2441_v37 }
 0x15f   :  { %v1057_v30 = vadd.f32 %v1037_v50, %v1033_v62  ;;  %v1149_v23 = vmul.f32 %v2549_v55, %v2441_v37  ;;  %v1150_v39 = vmul.f32 %v2553_v45, %v2441_v37  ;;  %v1066_v8 = vadd.f32 %v1038_v0, %v1034_v57  ;;  %v1090_v50 = vpop.permute.xlu0 %1089  ;;  %v1266_v28 = vpop.permute.xlu1 %1265 }
 0x160   :  { %v1075_v52 = vadd.f32 %v1039_v31, %v1035_v18  ;;  %v1151_v25 = vmul.f32 %v2573_v12, %v2441_v37  ;;  %v2587_v20 = vmul.f32 %v2437_v33, %v2525_v46  ;;  %v1164_v7 = vadd.f32 %v1148_v4, %v1100_v26  ;;  %v2600_v26 = vld [vmem:[%s2964_s3 + $0x20] sm:$0xff] }
 0x161   :  { %v1165_v19 = vadd.f32 %v1149_v23, %v1101_v42  ;;  %v1166_v44 = vadd.f32 %v1150_v39, %v1102_v43  ;;  %v1152_v1 = vmul.f32 %v2545_v15, %v2472_v58  ;;  %v1153_v53 = vmul.f32 %v2549_v55, %v2472_v58  ;;  %v2618_v39 = vld [vmem:[%s2964_s3 + $0x38] sm:$0xff] }
 0x162   :  { %3331 = vst [vmem:[#allocation44_spill] sm:$0xff] %v2587_v20  ;;  %v1167_v62 = vadd.f32 %v1151_v25, %v1103_v59  ;;  %v1154_v0 = vmul.f32 %v2553_v45, %v2472_v58  ;;  %v1155_v37 = vmul.f32 %v2573_v12, %v2472_v58  ;;  %v1180_v31 = vand.u32 2147483647, %v1164_v7  ;;  %v2606_v59 = vld [vmem:[%s2964_s3 + $0x28] sm:$0xff]  ;;  %v2612_v58 = vld [vmem:[%s2964_s3 + $0x30] sm:$0xff] }
 0x163   :  { %v1181_v57 = vand.u32 2147483647, %v1165_v19  ;;  %v1182_v18 = vand.u32 2147483647, %v1166_v44  ;;  %v1104_v42 = vsub.f32 %v1090_v50, %v2600_v26  ;;  %v1105_v4 = vsub.f32 %v1090_v50, %v2606_v59  ;;  %v2621_v7 = vpop.permute.xlu0 %1093 }
 0x164   :  { %v1183_v43 = vand.u32 2147483647, %v1167_v62  ;;  %v1106_v23 = vsub.f32 %v1090_v50, %v2612_v58  ;;  %v1107_v25 = vsub.f32 %v1090_v50, %v2618_v39  ;;  %v1008_v44 = vmul.f32 %v2437_v33, %v2514_v14 }
 0x165   :  { %v1168_v19 = vadd.f32 %v1152_v1, %v1104_v42  ;;  %v1009_v62 = vmul.f32 %v2462_v36, %v2514_v14  ;;  %v1010_v17 = vmul.f32 %v2466_v54, %v2514_v14  ;;  %v1169_v38 = vadd.f32 %v1153_v53, %v1105_v4 }
 0x166   :  { %v1170_v35 = vadd.f32 %v1154_v0, %v1106_v23  ;;  %v1171_v22 = vadd.f32 %v1155_v37, %v1107_v25  ;;  %v1011_v3 = vmul.f32 %v2470_v48, %v2514_v14  ;;  %v3334_v1 = vsub.f32 %v3332_v61, %v3333_v60 }
 0x167   :  { %v1184_v50 = vand.u32 2147483647, %v1168_v19  ;;  %v3335_v33 = vsub.f32 %v3332_v61, %v3232_v16  ;;  %v3337_v6 = vsub.f32 %v3332_v61, %v3336_v47  ;;  %v1185_v41 = vand.u32 2147483647, %v1169_v38 }
 0x168   :  { %v1024_v42 = vadd.f32 %v1008_v44, %v3334_v1  ;;  %v1186_v53 = vand.u32 2147483647, %v1170_v35  ;;  %v1187_v0 = vand.u32 2147483647, %v1171_v22  ;;  %v3338_v37 = vsub.f32 %v3332_v61, %v3272_v27  ;;  %v2657_v61 = vpop.permute.xlu0 %1097 }
 0x169   :  { %v1025_v20 = vadd.f32 %v1009_v62, %v3335_v33  ;;  %v1026_v10 = vadd.f32 %v1010_v17, %v3337_v6  ;;  %v2645_v4 = vmul.f32 %v2462_v36, %v2525_v46  ;;  %v2649_v16 = vmul.f32 %v2466_v54, %v2525_v46  ;;  %v1270_v54 = vpop.permute.xlu1 %1269 }
 0x16a   :  { %v1027_v14 = vadd.f32 %v1011_v3, %v3338_v37  ;;  %v1040_v60 = vand.u32 2147483647, %v1024_v42  ;;  %v2653_v38 = vmul.f32 %v2470_v48, %v2525_v46  ;;  %v2655_v35 = vadd.f32 %v1184_v50, %v1180_v31  ;;  %v2729_v31 = vld [vmem:[%s2964_s3 + $0x60] sm:$0xff] }
 0x16b   :  { %v1041_v23 = vand.u32 2147483647, %v1025_v20  ;;  %v1042_v25 = vand.u32 2147483647, %v1026_v10  ;;  %v2659_v27 = vadd.f32 %v1185_v41, %v1181_v57  ;;  %v2661_v36 = vadd.f32 %v1186_v53, %v1182_v18 }
 0x16c   :  { %v1043_v6 = vand.u32 2147483647, %v1027_v14  ;;  %v2663_v22 = vadd.f32 %v1187_v0, %v1183_v43  ;;  %v2666_v10 = vadd.f32 %v2555_v11, %v1040_v60  ;;  %v1248_v46 = vsub.f32 %v2581_v49, %v2530_v9  ;;  %v1238_v62 = vpop.permute.xlu0 %1237 }
 0x16d   :  { %v2668_v3 = vadd.f32 %v1057_v30, %v1041_v23  ;;  %v2670_v17 = vadd.f32 %v1066_v8, %v1042_v25  ;;  %v1249_v41 = vsub.f32 %v2581_v49, %v2539_v21  ;;  %v1250_v47 = vsub.f32 %v2581_v49, %v2560_v5  ;;  %v2685_v30 = vld [vmem:[%s2964_s3 + $0x40] sm:$0xff]  ;;  %v1126_v53 = vpop.permute.xlu1 %1125 }
 0x16e   :  { %v2672_v48 = vadd.f32 %v1075_v52, %v1043_v6  ;;  %v1251_v11 = vsub.f32 %v2581_v49, %v2567_v51  ;;  %v1108_v8 = vsub.f32 %v2621_v7, %v2685_v30  ;;  %v3339_v52 = vld [vmem:[#allocation57_spill] sm:$0xff]  ;;  %v2708_v49 = vld [vmem:[%s2964_s3 + $0x48] sm:$0xff]  ;;  %v1252_v60 = vsub.f32 %v1238_v62, %v2600_v26 }
 0x16f   :  { %v2691_v9 = vrot.slane %v3303_v13, %v3339_v52  ;;  %v2695_v21 = vrot.slane %v3309_v40, %v3339_v52  ;;  %v2699_v5 = vrot.slane %v3310_v34, %v3339_v52  ;;  %v2703_v51 = vrot.slane %v3263_v24, %v3339_v52  ;;  %v2715_v40 = vld [vmem:[%s2964_s3 + $0x50] sm:$0xff]  ;;  %v2722_v24 = vld [vmem:[%s2964_s3 + $0x58] sm:$0xff] }
 0x170   :  { %v1109_v13 = vsub.f32 %v2621_v7, %v2708_v49  ;;  %v1110_v34 = vsub.f32 %v2621_v7, %v2715_v40  ;;  %v1111_v20 = vsub.f32 %v2621_v7, %v2722_v24  ;;  %v2740_v7 = vld [vmem:[%s2964_s3 + $0x68] sm:$0xff]  ;;  %v1253_v23 = vsub.f32 %v1238_v62, %v2606_v59 }
 0x171   :  { %3340 = vst [vmem:[#allocation10_spill] sm:$0xff] %v2691_v9  ;;  %3341 = vst [vmem:[#allocation11_spill] sm:$0xff] %v2695_v21  ;;  %v1296_v18 = vmul.f32 %v2691_v9, %v1266_v28  ;;  %v1297_v43 = vmul.f32 %v2695_v21, %v1266_v28  ;;  %v1298_v19 = vmul.f32 %v2699_v5, %v1266_v28 }
 0x172   :  { %3342 = vst [vmem:[#allocation45_spill] sm:$0xff] %v2699_v5  ;;  %v1299_v44 = vmul.f32 %v2703_v51, %v1266_v28  ;;  %v1300_v1 = vmul.f32 %v2691_v9, %v1270_v54  ;;  %v1301_v42 = vmul.f32 %v2695_v21, %v1270_v54  ;;  %v1302_v33 = vmul.f32 %v2699_v5, %v1270_v54 }
 0x173   :  { %v1312_v0 = vadd.f32 %v1296_v18, %v1248_v46  ;;  %v1313_v37 = vadd.f32 %v1297_v43, %v1249_v41  ;;  %v1314_v14 = vadd.f32 %v1298_v19, %v1250_v47  ;;  %v1303_v28 = vmul.f32 %v2703_v51, %v1270_v54 }
 0x174   :  { %v1254_v25 = vsub.f32 %v1238_v62, %v2612_v58  ;;  %v1255_v6 = vsub.f32 %v1238_v62, %v2618_v39  ;;  %v1315_v52 = vadd.f32 %v1299_v44, %v1251_v11  ;;  %v1156_v21 = vmul.f32 %v2545_v15, %v1126_v53 }
 0x175   :  { %v1328_v50 = vand.u32 2147483647, %v1312_v0  ;;  %v1329_v57 = vand.u32 2147483647, %v1313_v37  ;;  %v1330_v5 = vand.u32 2147483647, %v1314_v14  ;;  %v1316_v9 = vadd.f32 %v1300_v1, %v1252_v60 }
 0x176   :  { %v1317_v46 = vadd.f32 %v1301_v42, %v1253_v23  ;;  %v1318_v41 = vadd.f32 %v1302_v33, %v1254_v25  ;;  %v1319_v47 = vadd.f32 %v1303_v28, %v1255_v6  ;;  %v1157_v54 = vmul.f32 %v2549_v55, %v1126_v53  ;;  %v2763_v42 = vld [vmem:[%s2964_s3 + $0x70] sm:$0xff]  ;;  %v3347_v14 = vld [vmem:[#allocation41_spill] sm:$0xff]  ;;  %v3366_v37 = vld [vmem:[#allocation3_spill] sm:$0xff] }
 0x177   :  { %v1158_v26 = vmul.f32 %v2553_v45, %v1126_v53  ;;  %v1159_v59 = vmul.f32 %v2573_v12, %v1126_v53  ;;  %v1332_v18 = vand.u32 2147483647, %v1316_v9  ;;  %v1172_v39 = vadd.f32 %v1156_v21, %v1108_v8  ;;  %v2770_v9 = vld [vmem:[%s2964_s3 + $0x78] sm:$0xff] }
 0x178   :  { %v1333_v58 = vand.u32 2147483647, %v1317_v46  ;;  %v1334_v43 = vand.u32 2147483647, %v1318_v41  ;;  %v1335_v11 = vand.u32 2147483647, %v1319_v47  ;;  %v1173_v19 = vadd.f32 %v1157_v54, %v1109_v13 }
 0x179   :  { %v2756_v44 = vadd.f32 %v1158_v26, %v1110_v34  ;;  %v2758_v62 = vadd.f32 %v1159_v59, %v1111_v20  ;;  %v1331_v1 = vand.u32 2147483647, %v1315_v52  ;;  %v1188_v21 = vand.u32 2147483647, %v1172_v39  ;;  %v3349_v23 = vld [vmem:[#allocation49_spill] sm:$0xff]  ;;  %v3352_v52 = vld [vmem:[#allocation40_spill] sm:$0xff] }
 0x17a   :  { %v2774_v13 = vadd.f32 %v1332_v18, %v1328_v50  ;;  %v2776_v34 = vadd.f32 %v1333_v58, %v1329_v57  ;;  %v2778_v20 = vadd.f32 %v1334_v43, %v1330_v5  ;;  %v1189_v53 = vand.u32 2147483647, %v1173_v19  ;;  %v3355_v18 = vld [vmem:[#allocation43_spill] sm:$0xff] }
 0x17b   :  { %v2780_v0 = vadd.f32 %v1335_v11, %v1331_v1  ;;  %v3348_v28 = vrot.slane %v3347_v14, 2  ;;  %v3350_v25 = vrot.slane %v3349_v23, 2  ;;  %v2791_v57 = vadd.f32 %v2655_v35, %v1188_v21  ;;  %v3365_v50 = vld [vmem:[#allocation27_spill] sm:$0xff] }
 0x17c   :  { %3343 = vst [vmem:[#allocation24_spill] sm:$0xff] %v2774_v13  ;;  %3344 = vst [vmem:[#allocation30_spill] sm:$0xff] %v2776_v34  ;;  %v2794_v5 = vadd.f32 %v2659_v27, %v1189_v53  ;;  %v3353_v46 = vrot.slane %v3352_v52, 2  ;;  %v3354_v26 = vrot.slane %v2235_v56, 2  ;;  %v609_v58 = vrot.slane %v3355_v18, 2 }
 0x17d   :  { %3345 = vst [vmem:[#allocation32_spill] sm:$0xff] %v2778_v20  ;;  %3346 = vst [vmem:[#allocation46_spill] sm:$0xff] %v2780_v0  ;;  %v314_v60 = vadd.f32 %v3348_v28, %v3347_v14  ;;  %v332_v6 = vadd.f32 %v3350_v25, %v3349_v23  ;;  %v620_v39 = vrot.slane %v2351_v63, 1  ;;  %v627_v35 = vrot.slane %v2342_v32, 2 }
 0x17e   :  { %3351 = vst [vmem:[#allocation61_spill] sm:$0xff] %v2794_v5  ;;  %v462_v41 = vadd.f32 %v3353_v46, %v3352_v52  ;;  %v480_v59 = vadd.f32 %v3354_v26, %v2235_v56  ;;  %v638_v27 = vrot.slane %v2504_v2, 1  ;;  %v610_v21 = vadd.f32 %v609_v58, %v3355_v18  ;;  %v3356_v52 = vld [vmem:[#allocation37_spill] sm:$0xff]  ;;  %v3363_v58 = vld [vmem:[#allocation50_spill] sm:$0xff] }
 0x17f   :  { %v315_v47 = vrot.slane %v314_v60, 1  ;;  %v333_v54 = vrot.slane %v332_v6, 1  ;;  %v2810_v14 = vadd.f32 %v620_v39, %v2351_v63  ;;  %v628_v56 = vadd.f32 %v627_v35, %v2342_v32  ;;  %v3361_v32 = vld [vmem:[#allocation38_spill] sm:$0xff] }
 0x180   :  { %v463_v43 = vrot.slane %v462_v41, 1  ;;  %v481_v1 = vrot.slane %v480_v59, 1  ;;  %v2814_v28 = vadd.f32 %v638_v27, %v2504_v2  ;;  %v611_v25 = vrot.slane %v610_v21, 1  ;;  %v3364_v27 = vld [vmem:[#allocation39_spill] sm:$0xff] }
 0x181   :  { %v316_v11 = vadd.f32 %v315_v47, %v314_v60  ;;  %v2806_v19 = vadd.f32 %v333_v54, %v332_v6  ;;  %v3357_v60 = vrot.slane %v3356_v52, 4  ;;  %v3358_v46 = vrot.slane %v2381_v29, 2  ;;  %v3359_v54 = vld [vmem:[#allocation16_spill] sm:$0xff] }
 0x182   :  { %v464_v53 = vadd.f32 %v463_v43, %v462_v41  ;;  %v482_v23 = vadd.f32 %v481_v1, %v480_v59  ;;  %v629_v41 = vrot.slane %v628_v56, 1  ;;  %v3360_v63 = vrot.slane %v3359_v54, 4 }
 0x183   :  { %v756_v6 = vadd.f32 %v3357_v60, %v3356_v52  ;;  %v767_v47 = vadd.f32 %v3358_v46, %v2381_v29  ;;  %v3362_v2 = vrot.slane %v3361_v32, 2  ;;  %v903_v59 = vrot.slane %v3363_v58, 4  ;;  %v950_v52 = vpop.permute.xlu1 %949 }
 0x184   :  { %v774_v26 = vadd.f32 %v3360_v63, %v3359_v54  ;;  %v612_v43 = vadd.f32 %v611_v25, %v610_v21  ;;  %v914_v1 = vrot.slane %v3364_v27, 2  ;;  %v630_v60 = vadd.f32 %v629_v41, %v628_v56 }
 0x185   :  { %v785_v18 = vadd.f32 %v3362_v2, %v3361_v32  ;;  %v757_v39 = vrot.slane %v756_v6, 2  ;;  %v768_v35 = vrot.slane %v767_v47, 1  ;;  %v904_v8 = vadd.f32 %v903_v59, %v3363_v58 }
 0x186   :  { %v775_v29 = vrot.slane %v774_v26, 2  ;;  %v915_v63 = vadd.f32 %v914_v1, %v3364_v27  ;;  %v921_v32 = vrot.slane %v3365_v50, 4  ;;  %v932_v0 = vrot.slane %v3366_v37, 2 }
 0x187   :  { %v786_v46 = vrot.slane %v785_v18, 1  ;;  %v758_v33 = vadd.f32 %v757_v39, %v756_v6  ;;  %v769_v54 = vadd.f32 %v768_v35, %v767_v47  ;;  %v905_v25 = vrot.slane %v904_v8, 2 }
 0x188   :  { %v776_v2 = vadd.f32 %v775_v29, %v774_v26  ;;  %v916_v34 = vrot.slane %v915_v63, 1  ;;  %v922_v56 = vadd.f32 %v921_v32, %v3365_v50  ;;  %v964_v41 = vsub.f32 %v950_v52, %v2729_v31  ;;  %v3367_v32 = vld [vmem:[#allocation44_spill] sm:$0xff] }
 0x189   :  { %v787_v21 = vadd.f32 %v786_v46, %v785_v18  ;;  %v759_v20 = vrot.slane %v758_v33, 1  ;;  %v906_v6 = vadd.f32 %v905_v25, %v904_v8  ;;  %v933_v47 = vadd.f32 %v932_v0, %v3366_v37  ;;  %v2843_v0 = vpop.permute.xlu1 %1241 }
 0x18a   :  { %v777_v58 = vrot.slane %v776_v2, 1  ;;  %v965_v59 = vsub.f32 %v950_v52, %v2740_v7  ;;  %v917_v35 = vadd.f32 %v916_v34, %v915_v63  ;;  %v923_v26 = vrot.slane %v922_v56, 2 }
 0x18b   :  { %v760_v39 = vadd.f32 %v759_v20, %v758_v33  ;;  %v966_v18 = vsub.f32 %v950_v52, %v2763_v42  ;;  %v907_v1 = vrot.slane %v906_v6, 1  ;;  %v934_v29 = vrot.slane %v933_v47, 1 }
 0x18c   :  { %v778_v27 = vadd.f32 %v777_v58, %v776_v2  ;;  %v967_v46 = vsub.f32 %v950_v52, %v2770_v9  ;;  %v924_v50 = vadd.f32 %v923_v26, %v922_v56  ;;  %v1028_v13 = vadd.f32 %v3367_v32, %v964_v41  ;;  %v3368_v58 = vld [vmem:[#allocation29_spill] sm:$0xff]  ;;  %v3369_v52 = vld [vmem:[#allocation26_spill] sm:$0xff] }
 0x18d   :  { %v1029_v5 = vadd.f32 %v2645_v4, %v965_v59  ;;  %v1030_v8 = vadd.f32 %v2649_v16, %v966_v18  ;;  %v908_v37 = vadd.f32 %v907_v1, %v906_v6  ;;  %v935_v33 = vadd.f32 %v934_v29, %v933_v47  ;;  %v3370_v16 = vld [vmem:[#allocation2_spill] sm:$0xff] }
 0x18e   :  { %v1031_v34 = vadd.f32 %v2653_v38, %v967_v46  ;;  %v1381_v20 = vsel %vm1380_vm1, %v316_v11, %v464_v53  ;;  %v925_v63 = vrot.slane %v924_v50, 1  ;;  %v1044_v2 = vand.u32 2147483647, %v1028_v13  ;;  %v3371_v59 = vld [vmem:[#allocation42_spill] sm:$0xff]  ;;  %v1274_v46 = vpop.permute.xlu1 %1273 }
 0x18f   :  { %v1045_v25 = vand.u32 2147483647, %v1029_v5  ;;  %v1382_v56 = vsel %vm1380_vm1, %v3369_v52, %v3368_v58  ;;  %v1046_v41 = vand.u32 2147483647, %v1030_v8  ;;  %v1383_v4 = vsel %vm1380_vm1, %v2806_v19, %v482_v23 }
 0x190   :  { %v1047_v26 = vand.u32 2147483647, %v1031_v34  ;;  %v1384_v6 = vsel %vm1380_vm1, %v3371_v59, %v3370_v16  ;;  %v926_v47 = vadd.f32 %v925_v63, %v924_v50  ;;  %v1050_v38 = vadd.f32 %v2666_v10, %v1044_v2 }
 0x191   :  { %v1059_v11 = vadd.f32 %v2668_v3, %v1045_v25  ;;  %v1386_v13 = vsel %vm1385_vm2, %v1381_v20, %v612_v43  ;;  %v1068_v5 = vadd.f32 %v2670_v17, %v1046_v41  ;;  %v1387_v18 = vsel %vm1385_vm2, %v1382_v56, %v2810_v14  ;;  %v1278_v25 = vpop.permute.xlu0 %1277 }
 0x192   :  { %v1077_v53 = vadd.f32 %v2672_v48, %v1047_v26  ;;  %v1388_v19 = vsel %vm1385_vm2, %v1383_v4, %v630_v60  ;;  %v1051_v23 = vrot.slane %v1050_v38, 4  ;;  %v1389_v29 = vsel %vm1385_vm2, %v1384_v6, %v2814_v28 }
 0x193   :  { %v1060_v1 = vrot.slane %v1059_v11, 4  ;;  %v1391_v10 = vsel %vm1390_vm3, %v1386_v13, %v760_v39  ;;  %v1069_v3 = vrot.slane %v1068_v5, 4  ;;  %v1392_v17 = vsel %vm1390_vm3, %v1387_v18, %v769_v54 }
 0x194   :  { %v1078_v43 = vrot.slane %v1077_v53, 4  ;;  %v1393_v48 = vsel %vm1390_vm3, %v1388_v19, %v778_v27  ;;  %v1052_v50 = vadd.f32 %v1051_v23, %v1050_v38  ;;  %v1394_v14 = vsel %vm1390_vm3, %v1389_v29, %v787_v21 }
 0x195   :  { %v1061_v32 = vadd.f32 %v1060_v1, %v1059_v11  ;;  %v1396_v60 = vsel %vm1395_vm4, %v1391_v10, %v908_v37  ;;  %v1070_v8 = vadd.f32 %v1069_v3, %v1068_v5  ;;  %v1397_v28 = vsel %vm1395_vm4, %v1392_v17, %v917_v35  ;;  %v3376_v5 = vld [vmem:[#allocation45_spill] sm:$0xff] }
 0x196   :  { %v1079_v34 = vadd.f32 %v1078_v43, %v1077_v53  ;;  %v1398_v39 = vsel %vm1395_vm4, %v1393_v48, %v926_v47  ;;  %v3372_v20 = vand.u32 2147483647, %v2756_v44  ;;  %v1053_v54 = vrot.slane %v1052_v50, 2  ;;  %v3375_v47 = vld [vmem:[#allocation11_spill] sm:$0xff] }
 0x197   :  { %v1062_v2 = vrot.slane %v1061_v32, 2  ;;  %v1399_v27 = vsel %vm1395_vm4, %v1394_v14, %v935_v33  ;;  %v3373_v21 = vand.u32 2147483647, %v2758_v62  ;;  %v1071_v58 = vrot.slane %v1070_v8, 2  ;;  %v1130_v33 = vpop.permute.xlu1 %1129  ;;  %v3374_v62 = vld [vmem:[#allocation10_spill] sm:$0xff] }
 0x198   :  { %v2875_v63 = vadd.f32 %v2661_v36, %v3372_v20  ;;  %v1080_v52 = vrot.slane %v1079_v34, 2  ;;  %v1256_v35 = vsub.f32 %v2843_v0, %v2685_v30  ;;  %v1054_v56 = vadd.f32 %v1053_v54, %v1052_v50 }
 0x199   :  { %v2881_v37 = vadd.f32 %v2663_v22, %v3373_v21  ;;  %v1063_v44 = vadd.f32 %v1062_v2, %v1061_v32  ;;  %v1257_v36 = vsub.f32 %v2843_v0, %v2708_v49  ;;  %v1258_v41 = vsub.f32 %v2843_v0, %v2715_v40 }
 0x19a   :  { %v1072_v26 = vadd.f32 %v1071_v58, %v1070_v8  ;;  %v1081_v4 = vadd.f32 %v1080_v52, %v1079_v34  ;;  %v1259_v22 = vsub.f32 %v2843_v0, %v2722_v24  ;;  %v1308_v16 = vmul.f32 %v3374_v62, %v1278_v25 }
 0x19b   :  { %v1055_v59 = vrot.slane %v1054_v56, 1  ;;  %v1064_v6 = vrot.slane %v1063_v44, 1  ;;  %v1309_v30 = vmul.f32 %v3375_v47, %v1278_v25  ;;  %v1304_v38 = vmul.f32 %v3374_v62, %v1274_v46  ;;  %v1246_v48 = vpop.permute.xlu1 %1245 }
 0x19c   :  { %v1073_v11 = vrot.slane %v1072_v26, 1  ;;  %v1082_v13 = vrot.slane %v1081_v4, 1  ;;  %v1305_v49 = vmul.f32 %v3375_v47, %v1274_v46  ;;  %v1306_v40 = vmul.f32 %v3376_v5, %v1274_v46 }
 0x19d   :  { %v1056_v53 = vadd.f32 %v1055_v59, %v1054_v56  ;;  %v1065_v18 = vadd.f32 %v1064_v6, %v1063_v44  ;;  %v1307_v19 = vmul.f32 %v2703_v51, %v1274_v46  ;;  %v1320_v23 = vadd.f32 %v1304_v38, %v1256_v35 }
 0x19e   :  { %v1074_v24 = vadd.f32 %v1073_v11, %v1072_v26  ;;  %v1083_v0 = vadd.f32 %v1082_v13, %v1081_v4  ;;  %v1321_v1 = vadd.f32 %v1305_v49, %v1257_v36  ;;  %v1322_v29 = vadd.f32 %v1306_v40, %v1258_v41  ;;  %v3383_v49 = vld [vmem:[#allocation30_spill] sm:$0xff] }
 0x19f   :  { %v2898_v10 = vsel %vm1400_vm5, %v1396_v60, %v1056_v53  ;;  %v2901_v3 = vsel %vm1400_vm5, %v1397_v28, %v1065_v18  ;;  %v1310_v43 = vmul.f32 %v3376_v5, %v1278_v25  ;;  %v1323_v17 = vadd.f32 %v1307_v19, %v1259_v22  ;;  %v3385_v19 = vld [vmem:[#allocation46_spill] sm:$0xff] }
 0x1a0   :  { %v2905_v50 = vsel %vm1400_vm5, %v1398_v39, %v1074_v24  ;;  %v2908_v46 = vsel %vm1400_vm5, %v1399_v27, %v1083_v0  ;;  %v1311_v32 = vmul.f32 %v2703_v51, %v1278_v25  ;;  %v1336_v14 = vand.u32 2147483647, %v1320_v23 }
 0x1a1   :  { %v1337_v8 = vand.u32 2147483647, %v1321_v1  ;;  %v1160_v60 = vmul.f32 %v2545_v15, %v1130_v33  ;;  %v1161_v34 = vmul.f32 %v2549_v55, %v1130_v33  ;;  %v1162_v28 = vmul.f32 %v2553_v45, %v1130_v33 }
 0x1a2   :  { %v1338_v20 = vand.u32 2147483647, %v1322_v29  ;;  %v1339_v54 = vand.u32 2147483647, %v1323_v17  ;;  %v1163_v2 = vmul.f32 %v2573_v12, %v1130_v33  ;;  %v1260_v39 = vsub.f32 %v1246_v48, %v2729_v31 }
 0x1a3   :  { %v3377_v27 = vsub.f32 %v2657_v61, %v2729_v31  ;;  %v3378_v51 = vsub.f32 %v2657_v61, %v2740_v7  ;;  %v3379_v15 = vsub.f32 %v2657_v61, %v2763_v42  ;;  %v1261_v45 = vsub.f32 %v1246_v48, %v2740_v7  ;;  %v3381_v7 = vld [vmem:[#allocation61_spill] sm:$0xff] }
 0x1a4   :  { %v3380_v58 = vsub.f32 %v2657_v61, %v2770_v9  ;;  %v1262_v52 = vsub.f32 %v1246_v48, %v2763_v42  ;;  %v1263_v35 = vsub.f32 %v1246_v48, %v2770_v9  ;;  %v1324_v31 = vadd.f32 %v1308_v16, %v1260_v39  ;;  %v3382_v16 = vld [vmem:[#allocation24_spill] sm:$0xff] }
 0x1a5   :  { %v1176_v21 = vadd.f32 %v1160_v60, %v3377_v27  ;;  %v1177_v25 = vadd.f32 %v1161_v34, %v3378_v51  ;;  %v1178_v55 = vadd.f32 %v1162_v28, %v3379_v15  ;;  %v1325_v41 = vadd.f32 %v1309_v30, %v1261_v45 }
 0x1a6   :  { %v1179_v12 = vadd.f32 %v1163_v2, %v3380_v58  ;;  %v1326_v26 = vadd.f32 %v1310_v43, %v1262_v52  ;;  %v1327_v4 = vadd.f32 %v1311_v32, %v1263_v35  ;;  %v1340_v22 = vand.u32 2147483647, %v1324_v31 }
 0x1a7   :  { %v1192_v56 = vand.u32 2147483647, %v1176_v21  ;;  %v1193_v44 = vand.u32 2147483647, %v1177_v25  ;;  %v1194_v36 = vand.u32 2147483647, %v1178_v55  ;;  %v1345_v38 = vadd.f32 %v3382_v16, %v1336_v14 }
 0x1a8   :  { %v1195_v33 = vand.u32 2147483647, %v1179_v12  ;;  %v1341_v6 = vand.u32 2147483647, %v1325_v41  ;;  %v1342_v47 = vand.u32 2147483647, %v1326_v26  ;;  %v1354_v5 = vadd.f32 %v3383_v49, %v1337_v8 }
 0x1a9   :  { %v1198_v62 = vadd.f32 %v2791_v57, %v1192_v56  ;;  %v1207_v59 = vadd.f32 %v3381_v7, %v1193_v44  ;;  %v1216_v61 = vadd.f32 %v2875_v63, %v1194_v36  ;;  %v1343_v9 = vand.u32 2147483647, %v1327_v4  ;;  %v3384_v57 = vld [vmem:[#allocation32_spill] sm:$0xff] }
 0x1aa   :  { %v1225_v42 = vadd.f32 %v2881_v37, %v1195_v33  ;;  %v1346_v53 = vadd.f32 %v1345_v38, %v1340_v22  ;;  %v1363_v18 = vadd.f32 %v3384_v57, %v1338_v20  ;;  %v1372_v23 = vadd.f32 %v3385_v19, %v1339_v54 }
 0x1ab   :  { %v1199_v11 = vrot.slane %v1198_v62, 4  ;;  %v1208_v13 = vrot.slane %v1207_v59, 4  ;;  %v1217_v30 = vrot.slane %v1216_v61, 4  ;;  %v1355_v37 = vadd.f32 %v1354_v5, %v1341_v6 }
 0x1ac   :  { %v1226_v40 = vrot.slane %v1225_v42, 4  ;;  %v1347_v29 = vrot.slane %v1346_v53, 4  ;;  %v1364_v43 = vadd.f32 %v1363_v18, %v1342_v47  ;;  %v1373_v17 = vadd.f32 %v1372_v23, %v1343_v9 }
 0x1ad   :  { %v1200_v63 = vadd.f32 %v1199_v11, %v1198_v62  ;;  %v1209_v24 = vadd.f32 %v1208_v13, %v1207_v59  ;;  %v1218_v0 = vadd.f32 %v1217_v30, %v1216_v61  ;;  %v1356_v8 = vrot.slane %v1355_v37, 4 }
 0x1ae   :  { %v1227_v1 = vadd.f32 %v1226_v40, %v1225_v42  ;;  %v1348_v34 = vadd.f32 %v1347_v29, %v1346_v53  ;;  %v1365_v28 = vrot.slane %v1364_v43, 4  ;;  %v1374_v2 = vrot.slane %v1373_v17, 4 }
 0x1af   :  { %v1201_v48 = vrot.slane %v1200_v63, 2  ;;  %v1210_v32 = vrot.slane %v1209_v24, 2  ;;  %v1219_v14 = vrot.slane %v1218_v0, 2  ;;  %v1357_v27 = vadd.f32 %v1356_v8, %v1355_v37 }
 0x1b0   :  { %v1228_v60 = vrot.slane %v1227_v1, 2  ;;  %v1349_v51 = vrot.slane %v1348_v34, 2  ;;  %v1366_v25 = vadd.f32 %v1365_v28, %v1364_v43  ;;  %v1375_v15 = vadd.f32 %v1374_v2, %v1373_v17 }
 0x1b1   :  { %v1202_v20 = vadd.f32 %v1201_v48, %v1200_v63  ;;  %v1211_v39 = vadd.f32 %v1210_v32, %v1209_v24  ;;  %v1220_v54 = vadd.f32 %v1219_v14, %v1218_v0  ;;  %v1358_v12 = vrot.slane %v1357_v27, 2 }
 0x1b2   :  { %v1229_v21 = vadd.f32 %v1228_v60, %v1227_v1  ;;  %v1350_v35 = vadd.f32 %v1349_v51, %v1348_v34  ;;  %v1367_v31 = vrot.slane %v1366_v25, 2  ;;  %v1376_v56 = vrot.slane %v1375_v15, 2 }
 0x1b3   :  { %v1203_v55 = vrot.slane %v1202_v20, 1  ;;  %v1212_v45 = vrot.slane %v1211_v39, 1  ;;  %v1221_v58 = vrot.slane %v1220_v54, 1  ;;  %v1359_v33 = vadd.f32 %v1358_v12, %v1357_v27 }
 0x1b4   :  { %v1230_v52 = vrot.slane %v1229_v21, 1  ;;  %v1351_v4 = vrot.slane %v1350_v35, 1  ;;  %v1368_v22 = vadd.f32 %v1367_v31, %v1366_v25  ;;  %v1377_v62 = vadd.f32 %v1376_v56, %v1375_v15 }
 0x1b5   :  { %v1204_v44 = vadd.f32 %v1203_v55, %v1202_v20  ;;  %v1213_v36 = vadd.f32 %v1212_v45, %v1211_v39  ;;  %v1222_v41 = vadd.f32 %v1221_v58, %v1220_v54  ;;  %v1360_v7 = vrot.slane %v1359_v33, 1 }
 0x1b6   :  { %v1231_v26 = vadd.f32 %v1230_v52, %v1229_v21  ;;  %v1352_v42 = vadd.f32 %v1351_v4, %v1350_v35  ;;  %v1369_v47 = vrot.slane %v1368_v22, 1  ;;  %v1378_v9 = vrot.slane %v1377_v62, 1 }
 0x1b7   :  { %v1406_v59 = vsel %vm1405_vm6, %v2898_v10, %v1204_v44  ;;  %v1407_v61 = vsel %vm1405_vm6, %v2901_v3, %v1213_v36  ;;  %v1408_v6 = vsel %vm1405_vm6, %v2905_v50, %v1222_v41  ;;  %v1361_v38 = vadd.f32 %v1360_v7, %v1359_v33 }
 0x1b8   :  { %v1409_v16 = vsel %vm1405_vm6, %v2908_v46, %v1231_v26  ;;  %v1370_v11 = vadd.f32 %v1369_v47, %v1368_v22  ;;  %v1379_v13 = vadd.f32 %v1378_v9, %v1377_v62  ;;  %v1411_v30 = vsel %vm1410_vm7, %v1406_v59, %v1352_v42 }
 0x1b9   :  { %v1412_v49 = vsel %vm1410_vm7, %v1407_v61, %v1361_v38  ;;  %1415 = vst [vmem:[%s2967_s4] sm:$0xff] %v1411_v30 }
 0x1ba   :  { %v1413_v10 = vsel %vm1410_vm7, %v1408_v6, %v1370_v11  ;;  %v1414_v3 = vsel %vm1410_vm7, %v1409_v16, %v1379_v13  ;;  %1416 = vst [vmem:[%s2967_s4 + $0x8] sm:$0xff] %v1412_v49 }
 0x1bb   :  { %1417 = vst [vmem:[%s2967_s4 + $0x10] sm:$0xff] %v1413_v10  ;;  %1418 = vst [vmem:[%s2967_s4 + $0x18] sm:$0xff] %v1414_v3 }

</bundles_post_ra>
